<compile_context>
chip_gen: v6e
topology: v6e:2x2x1
jax: 0.10.0
libtpu: 0.0.40
codegen_flags: <defaults>
</compile_context>

<pallas_src>
import functools

import jax
import jax.numpy as jnp
from jax.experimental import pallas as pl
from jax.experimental.pallas import tpu as pltpu


def _layerff_moe_kernel(mask_ref, pres_ref,                 # SMEM prefetch (flat)
                        hid_ref, gamma_ref, scale_ref,      # VMEM inputs
                        wi_ref, wo_ref,
                        out_ref,
                        ln_ref, acc_ref,                    # VMEM scratch
                        *, ln_eps):
    """One (token-tile i, expert e, F-chunk f) grid step."""
    del pres_ref  # only consumed by the wi/wo index_maps (skip-DMA table)
    i = pl.program_id(0)
    e = pl.program_id(1)
    f = pl.program_id(2)
    n_e = pl.num_programs(1)
    n_f = pl.num_programs(2)

    # --- per-token-tile init: fused RMS LayerNorm + accumulator zero ---------
    @pl.when((e == 0) & (f == 0))
    def _():
        h = hid_ref[...].astype(jnp.float32)                       # (tile_t, D)
        var = jnp.mean(h * h, axis=-1, keepdims=True)
        ln = h * jax.lax.rsqrt(var + ln_eps)
        ln = ln * gamma_ref[...].astype(jnp.float32)               # (1, D) bcast
        ln_ref[...] = ln.astype(ln_ref.dtype)                      # bf16 for MXU
        acc_ref[...] = jnp.zeros_like(acc_ref)

    # --- expert MLP (one F chunk), skipped if no token in tile routes to e ---
    @pl.when(mask_ref[i * n_e + e] != 0)
    def _():
        x = ln_ref[...]                                            # bf16 (tile_t, D)
        h = jnp.dot(x, wi_ref[...], preferred_element_type=jnp.float32)
        h = jnp.maximum(h, 0.0).astype(wo_ref.dtype)               # relu, bf16
        y = jnp.dot(h, wo_ref[...], preferred_element_type=jnp.float32)
        # combine weight: column e of the resident (tile_t, E) scale tile
        # (already sums degrading_factor[slot] * prob over top-k slots that
        #  route each token to expert e).
        s = scale_ref[...]                                         # f32 (tile_t, E)
        sel = jax.lax.broadcasted_iota(jnp.int32, s.shape, 1) == e
        w = jnp.sum(jnp.where(sel, s, 0.0), axis=-1, keepdims=True)  # (tile_t, 1)
        acc_ref[...] += w * y

    # --- epilogue: replace-where-nonzero + residual add ----------------------
    @pl.when((e == n_e - 1) & (f == n_f - 1))
    def _():
        acc = acc_ref[...]
        fwd = jnp.where(acc != 0.0, acc, ln_ref[...].astype(jnp.float32))
        out_ref[...] = (hid_ref[...].astype(jnp.float32) + fwd).astype(out_ref.dtype)


def switch_layer_ff_forward(hidden_states, expert_index, scale, wi, wo,
                            ln_weight, *, ln_eps=1e-6, tile_t=256, tile_f=256):
    """hidden_states: (B, S, D); expert_index/scale: (B, S, K);
    wi: (E, D, F); wo: (E, F, D); ln_weight: (D,).

    Pass wi/wo already in bf16 to avoid an extra full-weight HBM pass."""
    B, S, D = hidden_states.shape
    E, _, F = wi.shape
    K = expert_index.shape[-1]
    T = B * S

    tile_t = min(tile_t, T)
    tile_f = min(tile_f, F)
    assert T % tile_t == 0 and tile_t % 8 == 0, "pad tokens or adjust tile_t"
    assert F % tile_f == 0 and tile_f % 128 == 0, "adjust tile_f (multiple of 128)"
    n_tiles = T // tile_t
    n_f = F // tile_f

    hid = hidden_states.reshape(T, D)
    idx = expert_index.reshape(T, K).astype(jnp.int32)
    sc = scale.reshape(T, K).astype(jnp.float32)

    # Dense per-(token, expert) combine weight via scatter-add (O(T*K) work,
    # no (T, E, K) one-hot blowup); laid out tile-major so the kernel loads it
    # once per token tile as a lane-contiguous (tile_t, E) block.
    tok = jnp.broadcast_to(jnp.arange(T, dtype=jnp.int32)[:, None], (T, K))
    scale_dense = jnp.zeros((T, E), jnp.float32).at[tok, idx].add(sc)
    scale_tiled = scale_dense.reshape(n_tiles, tile_t, E)

    # Per-(token-tile, expert) "has any routed token" skip mask, flattened to
    # 1-D int32 so SMEM does not pad it to (8, 128) multiples.
    routed = jnp.zeros((T, E), jnp.int32).at[tok, idx].add(1)
    tile_mask = (routed.reshape(n_tiles, tile_t, E).sum(axis=1) > 0)
    mask_flat = tile_mask.reshape(-1).astype(jnp.int32)            # (n_tiles*E,)

    # Skip-DMA table: the expert block to *present* at each (tile, expert)
    # step.  Inactive experts re-present the most recently loaded expert
    # (carried across tiles), so the wi/wo block index does not change and no
    # weight DMA is issued; the stale weights are never read (pl.when gates
    # the compute).
    flat_pos = jnp.arange(n_tiles * E, dtype=jnp.int32)
    last_active = jax.lax.cummax(jnp.where(mask_flat != 0, flat_pos, -1), axis=0)
    pres_flat = jnp.where(last_active >= 0, last_active % E, 0).astype(jnp.int32)

    # Weights should already be bf16 (cast once at load time); fall back here.
    wi_b = wi if wi.dtype == jnp.bfloat16 else wi.astype(jnp.bfloat16)
    wo_b = wo if wo.dtype == jnp.bfloat16 else wo.astype(jnp.bfloat16)
    gamma = ln_weight.reshape(1, D).astype(jnp.float32)

    def _wi_map(i, e, f, mask, pres):
        j = i * E + e
        return (pres[j], 0, jnp.where(mask[j] != 0, f, n_f - 1))

    def _wo_map(i, e, f, mask, pres):
        j = i * E + e
        return (pres[j], jnp.where(mask[j] != 0, f, n_f - 1), 0)

    # VMEM budget: double-buffered pipeline blocks + scratch, with headroom.
    # TODO(synk): on v7x (64 MiB physical VMEM) cap tile_t/tile_f so `needed`
    # stays well under 64 MiB; on v6e larger limits let tile_t grow to 512+.
    in_itemsize = jnp.dtype(hidden_states.dtype).itemsize
    per_step_bytes = (
        2 * tile_t * D * in_itemsize          # hidden in + out tiles
        + D * 4                               # LN gamma
        + tile_t * E * 4                      # combine-weight tile
        + 2 * D * tile_f * 2                  # wi + wo bf16 blocks
    )
    scratch_bytes = tile_t * D * (2 + 4)      # bf16 LN tile + f32 accumulator
    needed = 2 * per_step_bytes + scratch_bytes
    vmem_limit = int(min(max(2 * needed, 32 << 20), 96 << 20))

    kernel = functools.partial(_layerff_moe_kernel, ln_eps=ln_eps)

    out = pl.pallas_call(
        kernel,
        out_shape=jax.ShapeDtypeStruct((T, D), hidden_states.dtype),
        grid_spec=pltpu.PrefetchScalarGridSpec(
            num_scalar_prefetch=2,                      # mask + presented-expert tables
            grid=(n_tiles, E, n_f),                     # experts & F chunks innermost
            in_specs=[
                pl.BlockSpec((tile_t, D), lambda i, e, f, m, p: (i, 0)),      # hidden
                pl.BlockSpec((1, D), lambda i, e, f, m, p: (0, 0)),           # LN gamma
                pl.BlockSpec((None, tile_t, E), lambda i, e, f, m, p: (i, 0, 0)),  # scales
                pl.BlockSpec((None, D, tile_f), _wi_map),                     # wi[e] chunk
                pl.BlockSpec((None, tile_f, D), _wo_map),                     # wo[e] chunk
            ],
            out_specs=pl.BlockSpec((tile_t, D), lambda i, e, f, m, p: (i, 0)),
            scratch_shapes=[
                pltpu.VMEM((tile_t, D), jnp.bfloat16),  # LayerNorm(x) tile
                pltpu.VMEM((tile_t, D), jnp.float32),   # MoE accumulator
            ],
        ),
        compiler_params=pltpu.CompilerParams(
            # token tiles across cores / megacore; expert + F axes are reductions.
            dimension_semantics=("parallel", "arbitrary", "arbitrary"),
            vmem_limit_bytes=vmem_limit,
        ),
    )(mask_flat, pres_flat, hid, gamma, scale_tiled, wi_b, wo_b)
    return out.reshape(B, S, D)


def _reference(hidden, expert_index, scale, wi, wo, ln_weight, ln_eps):
    """Pure-JAX reference mirroring the PyTorch LayerFF (offloading MoE)
    forward, with the same bf16 quantization points as the kernel."""
    B, S, D = hidden.shape
    E = wi.shape[0]
    h = hidden.astype(jnp.float32)
    var = jnp.mean(h * h, axis=-1, keepdims=True)
    ln = h * jax.lax.rsqrt(var + ln_eps) * ln_weight.astype(jnp.float32)
    ln_b = ln.astype(jnp.bfloat16)
    wi_b = wi.astype(jnp.bfloat16)
    wo_b = wo.astype(jnp.bfloat16)

    next_states = jnp.zeros((B, S, D), jnp.float32)
    for e in range(E):
        a = jnp.dot(ln_b.reshape(-1, D), wi_b[e], preferred_element_type=jnp.float32)
        a = jnp.maximum(a, 0.0).astype(jnp.bfloat16)
        y = jnp.dot(a, wo_b[e], preferred_element_type=jnp.float32).reshape(B, S, D)
        w = jnp.sum(jnp.where(expert_index == e, scale, 0.0), axis=-1, keepdims=True)
        next_states = next_states + w * y
    fwd = jnp.where(next_states != 0.0, next_states, ln_b.astype(jnp.float32))
    return (h + fwd).astype(hidden.dtype)


if __name__ == "__main__":
    # ---- synthetic config (SwitchTransformersConfig-like), MXU-aligned ------
    B, S = 2, 128        # batch, sequence -> T = 256 tokens, 2 token tiles
    D, F = 256, 512      # d_model, d_ff   (256-multiples -> full MXU width)
    E = 4                # num_experts
    K = 2                # topk routing slots provided by the hash table
    LN_EPS = 1e-6
    degrading_factor = [0.5, 0.25, 0.25]

    key = jax.random.PRNGKey(0)
    k_h, k_wi, k_wo, k_idx, k_exp, k_g = jax.random.split(key, 6)

    hidden_states = jax.random.normal(k_h, (B, S, D), dtype=jnp.float32)

    # Expert weights (module __init__ builds E DenseActDense experts:
    # wi: D->F, wo: F->D, no bias).  Cast to bf16 ONCE here (storage format).
    wi = (jax.random.normal(k_wi, (E, D, F), dtype=jnp.float32) * 0.05)
    wo = (jax.random.normal(k_wo, (E, F, D), dtype=jnp.float32) * 0.05)
    wi_bf16 = wi.astype(jnp.bfloat16)
    wo_bf16 = wo.astype(jnp.bfloat16)
    ln_weight = 1.0 + 0.1 * jax.random.normal(k_g, (D,), dtype=jnp.float32)

    # ---- hash-table-provided routing (hard targets, is_soft_target=False) ---
    # Route only to experts {0, 1, 3} so expert 2 exercises the skip-compute
    # and skip-DMA paths in every token tile.
    used_experts = jnp.asarray([0, 1, 3], dtype=jnp.int32)
    draws = jax.random.randint(k_idx, (2 * B, S, K), 0, used_experts.shape[0])
    full_expert_index = used_experts[draws]
    batch_idx, hkey, topk = 1, "layer0", K
    hash_table_stack = [({hkey: full_expert_index}, batch_idx, hkey, topk)]

    table, batch_idx, hkey, topk = hash_table_stack.pop()
    expert_index = table[hkey][batch_idx * B:(batch_idx + 1) * B, :, :]   # (B, S, K)

    # prob = (1/E) * (1 + Exponential(rate=0.5) sample), per token & slot.
    # TODO(synk): torch draws these samples per masked-token group inside the
    # expert loop; here they are drawn deterministically per (token, slot).
    exp_sample = jax.random.exponential(k_exp, (B, S, K), dtype=jnp.float32) / 0.5
    prob = (1.0 / E) * (1.0 + exp_sample)
    dfac = jnp.asarray(degrading_factor[:K], dtype=jnp.float32)
    scale = dfac[None, None, :] * prob                                    # (B, S, K)

    # ---- run kernel + check against pure-JAX reference ----------------------
    out = switch_layer_ff_forward(hidden_states, expert_index, scale,
                                  wi_bf16, wo_bf16, ln_weight,
                                  ln_eps=LN_EPS, tile_t=128, tile_f=256)
    out = jax.block_until_ready(out)

    ref = _reference(hidden_states, expert_index.astype(jnp.int32), scale,
                     wi_bf16, wo_bf16, ln_weight, LN_EPS)
    assert out.shape == (B, S, D)
    assert jnp.allclose(out, ref, atol=2e-2, rtol=2e-2), "mismatch vs reference"

    print("KERNEL_OK")
</pallas_src>

<mosaic_0001>
module attributes {stable_mosaic.version = 11 : i64} {
  func.func @_layerff_moe_kernel(%arg0: i32, %arg1: i32, %arg2: i32, %arg3: memref<8xi32, #tpu.memory_space<smem>>, %arg4: memref<8xi32, #tpu.memory_space<smem>>, %arg5: memref<128x256xf32, #tpu.memory_space<vmem>>, %arg6: memref<1x256xf32, #tpu.memory_space<vmem>>, %arg7: memref<1x128x4xf32, #tpu.memory_space<vmem>>, %arg8: memref<1x256x256xbf16, #tpu.memory_space<vmem>>, %arg9: memref<1x256x256xbf16, #tpu.memory_space<vmem>>, %arg10: memref<128x256xf32, #tpu.memory_space<vmem>>, %arg11: memref<128x256xbf16, #tpu.memory_space<vmem>>, %arg12: memref<128x256xf32, #tpu.memory_space<vmem>>) attributes {dimension_semantics = [#tpu.dimension_semantics<parallel>, #tpu.dimension_semantics<arbitrary>, #tpu.dimension_semantics<arbitrary>], iteration_bounds = array<i64: 2, 4, 2>, scalar_prefetch = 2 : i64, scratch_operands = 2 : i64, tpu.core_type = #tpu.core_type<tc>, window_params = [{transform_indices = @transform_0, window_bounds = array<i64: 128, 256>}, {pipeline_mode = #tpu.pipeline_mode<synchronous>, transform_indices = @transform_1, window_bounds = array<i64: 1, 256>}, {transform_indices = @transform_2, window_bounds = array<i64: 1, 128, 4>}, {transform_indices = @transform_3, window_bounds = array<i64: 1, 256, 256>}, {transform_indices = @transform_4, window_bounds = array<i64: 1, 256, 256>}, {transform_indices = @transform_5, window_bounds = array<i64: 128, 256>}]} {
    %c0_i32 = arith.constant 0 : i32
    %0 = arith.cmpi eq, %arg1, %c0_i32 : i32
    %c0_i32_0 = arith.constant 0 : i32
    %1 = arith.cmpi eq, %arg2, %c0_i32_0 : i32
    %2 = arith.andi %0, %1 : i1
    %3 = arith.extui %2 : i1 to i32
    %c0_i32_1 = arith.constant 0 : i32
    %4 = arith.cmpi ne, %3, %c0_i32_1 : i32
    scf.if %4 {
      %c0 = arith.constant 0 : index
      %c0_5 = arith.constant 0 : index
      %17 = vector.load %arg5[%c0, %c0_5] : memref<128x256xf32, #tpu.memory_space<vmem>>, vector<128x256xf32>
      %18 = arith.mulf %17, %17 : vector<128x256xf32>
      %cst = arith.constant dense<0.000000e+00> : vector<128xf32>
      %19 = vector.multi_reduction <add>, %18, %cst [1] : vector<128x256xf32> to vector<128xf32>
      %20 = vector.shape_cast %19 : vector<128xf32> to vector<128x1xf32>
      %cst_6 = arith.constant 2.560000e+02 : f32
      %21 = vector.broadcast %cst_6 : f32 to vector<128x1xf32>
      %22 = arith.divf %20, %21 : vector<128x1xf32>
      %cst_7 = arith.constant 9.99999997E-7 : f32
      %23 = vector.broadcast %cst_7 : f32 to vector<128x1xf32>
      %24 = arith.addf %22, %23 : vector<128x1xf32>
      %25 = math.rsqrt %24 : vector<128x1xf32>
      %26 = vector.broadcast %25 : vector<128x1xf32> to vector<128x256xf32>
      %27 = arith.mulf %17, %26 : vector<128x256xf32>
      %c0_8 = arith.constant 0 : index
      %c0_9 = arith.constant 0 : index
      %28 = vector.load %arg6[%c0_8, %c0_9] : memref<1x256xf32, #tpu.memory_space<vmem>>, vector<1x256xf32>
      %29 = vector.broadcast %28 : vector<1x256xf32> to vector<128x256xf32>
      %30 = arith.mulf %27, %29 : vector<128x256xf32>
      %31 = arith.truncf %30 : vector<128x256xf32> to vector<128x256xbf16>
      %c0_10 = arith.constant 0 : index
      %c0_11 = arith.constant 0 : index
      %32 = vector.load %arg11[%c0_10, %c0_11] : memref<128x256xbf16, #tpu.memory_space<vmem>>, vector<128x256xbf16>
      tpu.vector_store %arg11[%c0_10, %c0_11], %31 {strides = array<i32>} : memref<128x256xbf16, #tpu.memory_space<vmem>>, vector<128x256xbf16>,
      %cst_12 = arith.constant 0.000000e+00 : f32
      %33 = vector.broadcast %cst_12 : f32 to vector<128x256xf32>
      %c0_13 = arith.constant 0 : index
      %c0_14 = arith.constant 0 : index
      %34 = vector.load %arg12[%c0_13, %c0_14] : memref<128x256xf32, #tpu.memory_space<vmem>>, vector<128x256xf32>
      tpu.vector_store %arg12[%c0_13, %c0_14], %33 {strides = array<i32>} : memref<128x256xf32, #tpu.memory_space<vmem>>, vector<128x256xf32>,
    } else {
    }
    %c4_i32 = arith.constant 4 : i32
    %5 = arith.muli %arg0, %c4_i32 : i32
    %6 = arith.addi %5, %arg1 : i32
    %7 = arith.index_cast %6 : i32 to index
    %8 = memref.load %arg3[%7] : memref<8xi32, #tpu.memory_space<smem>>
    %c0_i32_2 = arith.constant 0 : i32
    %9 = arith.cmpi ne, %8, %c0_i32_2 : i32
    %10 = arith.extui %9 : i1 to i32
    %c0_i32_3 = arith.constant 0 : i32
    %11 = arith.cmpi ne, %10, %c0_i32_3 : i32
    scf.if %11 {
      %c0 = arith.constant 0 : index
      %c0_5 = arith.constant 0 : index
      %17 = vector.load %arg11[%c0, %c0_5] : memref<128x256xbf16, #tpu.memory_space<vmem>>, vector<128x256xbf16>
      %c0_6 = arith.constant 0 : index
      %c0_7 = arith.constant 0 : index
      %c0_8 = arith.constant 0 : index
      %18 = vector.load %arg8[%c0_6, %c0_7, %c0_8] : memref<1x256x256xbf16, #tpu.memory_space<vmem>>, vector<1x256x256xbf16>
      %19 = vector.shape_cast %18 : vector<1x256x256xbf16> to vector<256x256xbf16>
      %cst = arith.constant dense<0.000000e+00> : vector<128x256xf32>
      %20 = tpu.matmul %17, %19, %cst {dimension_numbers = #tpu.dot_dimension_numbers<[1], [0], [0], [1], [0, 0, 1, 1], [], []>} : vector<128x256xbf16>, vector<256x256xbf16>, vector<128x256xf32> -> vector<128x256xf32>
      %cst_9 = arith.constant 0.000000e+00 : f32
      %21 = vector.broadcast %cst_9 : f32 to vector<128x256xf32>
      %22 = arith.maximumf %20, %21 : vector<128x256xf32>
      %23 = arith.truncf %22 : vector<128x256xf32> to vector<128x256xbf16>
      %c0_10 = arith.constant 0 : index
      %c0_11 = arith.constant 0 : index
      %c0_12 = arith.constant 0 : index
      %24 = vector.load %arg9[%c0_10, %c0_11, %c0_12] : memref<1x256x256xbf16, #tpu.memory_space<vmem>>, vector<1x256x256xbf16>
      %25 = vector.shape_cast %24 : vector<1x256x256xbf16> to vector<256x256xbf16>
      %cst_13 = arith.constant dense<0.000000e+00> : vector<128x256xf32>
      %26 = tpu.matmul %23, %25, %cst_13 {dimension_numbers = #tpu.dot_dimension_numbers<[1], [0], [0], [1], [0, 0, 1, 1], [], []>} : vector<128x256xbf16>, vector<256x256xbf16>, vector<128x256xf32> -> vector<128x256xf32>
      %c0_14 = arith.constant 0 : index
      %c0_15 = arith.constant 0 : index
      %c0_16 = arith.constant 0 : index
      %27 = vector.load %arg7[%c0_14, %c0_15, %c0_16] : memref<1x128x4xf32, #tpu.memory_space<vmem>>, vector<1x128x4xf32>
      %28 = vector.shape_cast %27 : vector<1x128x4xf32> to vector<128x4xf32>
      %29 = tpu.iota {dimensions = array<i32: 1>} : vector<128x4xi32>
      %30 = vector.broadcast %arg1 : i32 to vector<128x4xi32>
      %31 = arith.cmpi eq, %29, %30 : vector<128x4xi32>
      %cst_17 = arith.constant 0.000000e+00 : f32
      %32 = vector.broadcast %cst_17 : f32 to vector<128x4xf32>
      %33 = arith.select %31, %28, %32 : vector<128x4xi1>, vector<128x4xf32>
      %cst_18 = arith.constant dense<0.000000e+00> : vector<128xf32>
      %34 = vector.multi_reduction <add>, %33, %cst_18 [1] : vector<128x4xf32> to vector<128xf32>
      %35 = vector.shape_cast %34 : vector<128xf32> to vector<128x1xf32>
      %c0_19 = arith.constant 0 : index
      %c0_20 = arith.constant 0 : index
      %36 = vector.load %arg12[%c0_19, %c0_20] : memref<128x256xf32, #tpu.memory_space<vmem>>, vector<128x256xf32>
      %37 = vector.broadcast %35 : vector<128x1xf32> to vector<128x256xf32>
      %38 = arith.mulf %37, %26 : vector<128x256xf32>
      %39 = arith.addf %36, %38 : vector<128x256xf32>
      %c0_21 = arith.constant 0 : index
      %c0_22 = arith.constant 0 : index
      %40 = vector.load %arg12[%c0_21, %c0_22] : memref<128x256xf32, #tpu.memory_space<vmem>>, vector<128x256xf32>
      tpu.vector_store %arg12[%c0_21, %c0_22], %39 {strides = array<i32>} : memref<128x256xf32, #tpu.memory_space<vmem>>, vector<128x256xf32>,
    } else {
    }
    %c3_i32 = arith.constant 3 : i32
    %12 = arith.cmpi eq, %arg1, %c3_i32 : i32
    %c1_i32 = arith.constant 1 : i32
    %13 = arith.cmpi eq, %arg2, %c1_i32 : i32
    %14 = arith.andi %12, %13 : i1
    %15 = arith.extui %14 : i1 to i32
    %c0_i32_4 = arith.constant 0 : i32
    %16 = arith.cmpi ne, %15, %c0_i32_4 : i32
    scf.if %16 {
      %c0 = arith.constant 0 : index
      %c0_5 = arith.constant 0 : index
      %17 = vector.load %arg12[%c0, %c0_5] : memref<128x256xf32, #tpu.memory_space<vmem>>, vector<128x256xf32>
      %cst = arith.constant 0.000000e+00 : f32
      %18 = vector.broadcast %cst : f32 to vector<128x256xf32>
      %19 = arith.cmpf one, %17, %18 : vector<128x256xf32>
      %c0_6 = arith.constant 0 : index
      %c0_7 = arith.constant 0 : index
      %20 = vector.load %arg11[%c0_6, %c0_7] : memref<128x256xbf16, #tpu.memory_space<vmem>>, vector<128x256xbf16>
      %21 = arith.extf %20 : vector<128x256xbf16> to vector<128x256xf32>
      %22 = arith.select %19, %17, %21 : vector<128x256xi1>, vector<128x256xf32>
      %c0_8 = arith.constant 0 : index
      %c0_9 = arith.constant 0 : index
      %23 = vector.load %arg5[%c0_8, %c0_9] : memref<128x256xf32, #tpu.memory_space<vmem>>, vector<128x256xf32>
      %24 = arith.addf %23, %22 : vector<128x256xf32>
      %c0_10 = arith.constant 0 : index
      %c0_11 = arith.constant 0 : index
      %25 = vector.load %arg10[%c0_10, %c0_11] : memref<128x256xf32, #tpu.memory_space<vmem>>, vector<128x256xf32>
      tpu.vector_store %arg10[%c0_10, %c0_11], %24 {strides = array<i32>} : memref<128x256xf32, #tpu.memory_space<vmem>>, vector<128x256xf32>,
    } else {
    }
    return
  }
  func.func @transform_0(%arg0: i32, %arg1: i32, %arg2: i32, %arg3: memref<8xi32, #tpu.memory_space<smem>>, %arg4: memref<8xi32, #tpu.memory_space<smem>>) -> (i32, i32) {
    %c0_i32 = arith.constant 0 : i32
    %c0_i32_0 = arith.constant 0 : i32
    return %arg0, %c0_i32 : i32, i32
  }
  func.func @transform_1(%arg0: i32, %arg1: i32, %arg2: i32, %arg3: memref<8xi32, #tpu.memory_space<smem>>, %arg4: memref<8xi32, #tpu.memory_space<smem>>) -> (i32, i32) {
    %c0_i32 = arith.constant 0 : i32
    %c0_i32_0 = arith.constant 0 : i32
    %c0_i32_1 = arith.constant 0 : i32
    return %c0_i32, %c0_i32_0 : i32, i32
  }
  func.func @transform_2(%arg0: i32, %arg1: i32, %arg2: i32, %arg3: memref<8xi32, #tpu.memory_space<smem>>, %arg4: memref<8xi32, #tpu.memory_space<smem>>) -> (i32, i32, i32) {
    %c0_i32 = arith.constant 0 : i32
    %c0_i32_0 = arith.constant 0 : i32
    %c0_i32_1 = arith.constant 0 : i32
    return %arg0, %c0_i32, %c0_i32_0 : i32, i32, i32
  }
  func.func @transform_3(%arg0: i32, %arg1: i32, %arg2: i32, %arg3: memref<8xi32, #tpu.memory_space<smem>>, %arg4: memref<8xi32, #tpu.memory_space<smem>>) -> (i32, i32, i32) {
    %c4_i32 = arith.constant 4 : i32
    %0 = arith.muli %arg0, %c4_i32 : i32
    %1 = arith.addi %0, %arg1 : i32
    %2 = arith.index_cast %1 : i32 to index
    %3 = memref.load %arg4[%2] : memref<8xi32, #tpu.memory_space<smem>>
    %4 = arith.index_cast %1 : i32 to index
    %5 = memref.load %arg3[%4] : memref<8xi32, #tpu.memory_space<smem>>
    %c0_i32 = arith.constant 0 : i32
    %6 = arith.cmpi ne, %5, %c0_i32 : i32
    %c1_i32 = arith.constant 1 : i32
    %7 = arith.select %6, %arg2, %c1_i32 : i32
    %c0_i32_0 = arith.constant 0 : i32
    %c0_i32_1 = arith.constant 0 : i32
    return %3, %c0_i32_0, %7 : i32, i32, i32
  }
  func.func @transform_4(%arg0: i32, %arg1: i32, %arg2: i32, %arg3: memref<8xi32, #tpu.memory_space<smem>>, %arg4: memref<8xi32, #tpu.memory_space<smem>>) -> (i32, i32, i32) {
    %c4_i32 = arith.constant 4 : i32
    %0 = arith.muli %arg0, %c4_i32 : i32
    %1 = arith.addi %0, %arg1 : i32
    %2 = arith.index_cast %1 : i32 to index
    %3 = memref.load %arg4[%2] : memref<8xi32, #tpu.memory_space<smem>>
    %4 = arith.index_cast %1 : i32 to index
    %5 = memref.load %arg3[%4] : memref<8xi32, #tpu.memory_space<smem>>
    %c0_i32 = arith.constant 0 : i32
    %6 = arith.cmpi ne, %5, %c0_i32 : i32
    %c1_i32 = arith.constant 1 : i32
    %7 = arith.select %6, %arg2, %c1_i32 : i32
    %c0_i32_0 = arith.constant 0 : i32
    %c0_i32_1 = arith.constant 0 : i32
    return %3, %7, %c0_i32_0 : i32, i32, i32
  }
  func.func @transform_5(%arg0: i32, %arg1: i32, %arg2: i32, %arg3: memref<8xi32, #tpu.memory_space<smem>>, %arg4: memref<8xi32, #tpu.memory_space<smem>>) -> (i32, i32) {
    %c0_i32 = arith.constant 0 : i32
    %c0_i32_0 = arith.constant 0 : i32
    return %arg0, %c0_i32 : i32, i32
  }
}

</mosaic_0001>

<bundles_post_ra>
// kernel: tpu_custom_call.1
= control target key start
LH: loop header
LB: loop body
LE: loop exit
PB: predicated region body
PF: predicated region fallthrough
CT: control target
= control target key end

     0   :  { %s3955_s0 = inlined_call_operand.vmem [shape: s32[8], index: 0, kind: input, shape index: {}]   ;;  %s3956_s2 = inlined_call_operand.hbm [shape: f32[256,256], index: 2, kind: input, shape index: {}]   ;;  %s3957_s3 = inlined_call_operand.vmem [shape: f32[1,256], index: 3, kind: input, shape index: {}]   ;;  %s3958_s4 = inlined_call_operand.vmem [shape: f32[2,128,4], index: 4, kind: input, shape index: {}]   ;;  %s3959_s5 = inlined_call_operand.hbm [shape: bf16[4,256,512], index: 5, kind: input, shape index: {}]   ;;  %s3960_s6 = inlined_call_operand.hbm [shape: bf16[4,512,256], index: 6, kind: input, shape index: {}]   ;;  %s3961_s7 = inlined_call_operand.hbm [shape: f32[256,256], index: 7, kind: output, shape index: {}]   ;;  %s3962_s1 = inlined_call_operand.vmem [shape: s32[8], index: 1, kind: input, shape index: {}]  }
   0x1   :  { %3986 = sst [smem:[#allocation44_spill]] %s3956_s2  ;;  %s12_s26 = sshll.u32 %s3955_s0, 4  ;;  %s13_s26 = int_to_ptr.vmem [resolvable:$true] %s12_s26 }
   0x2   :  { %3987 = sst [smem:[#allocation45_spill]] %s3957_s3  ;;  %s16_s29 = sshll.u32 %s3962_s1, 4  ;;  %s17_s29 = int_to_ptr.vmem [resolvable:$true] %s16_s29 }
   0x3   :  { %3988 = sst [smem:[#allocation46_spill]] %s3958_s4  ;;  %s2682_s30 = scalar_lea.vmem %s13_s26, 16 }
   0x4   :  { %3989 = sst [smem:[#allocation47_spill]] %s3959_s5  ;;  %p2683_p0 = scmp.ne.s32.totalorder %s13_s26, %s2682_s30 }
   0x5   :  { %3990 = sst [smem:[#allocation48_spill]] %s3960_s6  ;;  %p2687_p1 = scmp.lt.s32.totalorder %s13_s26, %s13_s26 }
   0x6   :  { %3991 = sst [smem:[#allocation49_spill]] %s3961_s7  ;;  %p2688_p2 = scmp.lt.s32.totalorder %s2682_s30, %s2682_s30 }
   0x8   :  { %p2689_p3 = por %p2688_p2, %p2687_p1 }
   0xa   :  { %p2690_p4 = pnand %p2689_p3, %p2683_p0 }
   0xc   :  { %2693 = shalt.err (!%p2690_p4)  }
   0xd   :  { %s2962_s8 = smov [#allocation5]   ;;  %s2694_s9 = scalar_lea.vmem %s17_s29, 16 }
   0xe   :  { %15 = dma.vmem_to_smem %s13_s26, 16, %s2962_s8, [#allocation4] }
   0xf   :  { %p2695_p5 = scmp.ne.s32.totalorder %s17_s29, %s2694_s9  ;;  %p2699_p6 = scmp.lt.s32.totalorder %s17_s29, %s17_s29 }
  0x10   :  { %p2700_p7 = scmp.lt.s32.totalorder %s2694_s9, %s2694_s9 }
  0x12   :  { %p2701_p8 = por %p2700_p7, %p2699_p6 }
  0x14   :  { %p2702_p9 = pnand %p2701_p8, %p2695_p5 }
  0x16   :  { %2705 = shalt.err (!%p2702_p9)  }
  0x17   :  { %s2963_s0 = smov [#allocation6]  }
  0x18   :  { %19 = dma.vmem_to_smem %s17_s29, 16, %s2963_s0, [#allocation4] }
  0x19   :  { %2880 = dma.done.wait [#allocation4], 32 }
  0x1a   :  { %2881 = vsyncadd [#allocation4], 4294967264 }
  0x1b   :  { %21 = sfence }
  0x1c   :  { %22 = vsyncpa [#allocation8], 0 }
  0x1d   :  { %24 = vsyncpa [#allocation8 + $0x1], 0 }
  0x1e   :  { %25 = vsyncpa [#allocation11], 0 }
  0x1f   :  { %27 = vsyncpa [#allocation11 + $0x1], 0 }
  0x20   :  { %28 = vsyncpa [#allocation9], 0 }
  0x21   :  { %30 = vsyncpa [#allocation9 + $0x1], 0  ;;  %s3021_s1 = smov 0   ;;  %s3023_s10 = smov 0  }
  0x22   :  { %s3025_s11 = smov 0   ;;  %s3027_s12 = smov 0  }
  0x23   :  { %s3029_s13 = smov 0   ;;  %s3031_s14 = smov 0  }
  0x24   :  { %s3033_s15 = smov 0   ;;  %s3035_s16 = smov 0  }
  0x25   :  { %s3037_s17 = smov 0   ;;  %s3039_s18 = smov 0  }
  0x26   :  { %s3041_s19 = smov 0   ;;  %s3043_s20 = smov 0  }
  0x27   :  { %s3045_s21 = smov 0   ;;  %s3047_s22 = smov 0  }
  0x28   :  { %s3049_s23 = smov 0   ;;  %s3051_s24 = smov 0  }
  0x29 LB: > { %3992 = sst [smem:[#allocation27_spill]] %s2900_s1  ;;  %s48_s25 = sadd.s32 1, %s2948_s21  ;;  %s2960_s24 = sphi %s3051_s24, %s36_s24   ;;  %s2956_s23 = sphi %s3049_s23, %s4085_s23   ;;  %s2952_s22 = sphi %s3047_s22, %s4084_s22   ;;  %s2948_s21 = sphi %s3045_s21, %s4091_s21   ;;  %s2944_s20 = sphi %s3043_s20, %s4082_s20   ;;  %s2940_s19 = sphi %s3041_s19, %s4081_s19   ;;  %s2936_s18 = sphi %s3039_s18, %s4090_s18   ;;  %s2932_s17 = sphi %s3037_s17, %s4080_s17   ;;  %s2928_s16 = sphi %s3035_s16, %s4089_s16   ;;  %s2924_s15 = sphi %s3033_s15, %s4088_s15   ;;  %s2920_s14 = sphi %s3031_s14, %s4078_s14   ;;  %s2916_s13 = sphi %s3029_s13, %s4087_s13   ;;  %s2912_s12 = sphi %s3027_s12, %s4086_s12   ;;  %s2908_s11 = sphi %s3025_s11, %s4076_s11   ;;  %s2904_s10 = sphi %s3023_s10, %s4075_s10   ;;  %s2900_s1 = sphi %s3021_s1, %s4074_s1  }
  0x2a   : > { %3993 = sst [smem:[#allocation28_spill]] %s2904_s10  ;;  %p49_p10 = scmp.ge.s32.totalorder %s48_s25, 2 }
  0x2b   : > { %3994 = sst [smem:[#allocation29_spill]] %s2908_s11  ;;  %s51_s26 = sadd.s32 1, %s2952_s22 }
  0x2c   : > { %3995 = sst [smem:[#allocation30_spill]] %s2920_s14  ;;  %s55_s27 = sadd.s32 1, %s2956_s23 }
  0x2d   : > { %3996 = sst [smem:[#allocation31_spill]] %s2932_s17  ;;  %s2208_s28 = sshll.u32 %s2956_s23, 2 }
  0x2e   : > { %3997 = sst [smem:[#allocation32_spill]] %s2936_s18  ;;  %s4093_s26 = smov (!%p49_p10, %s51_s26), %s2952_s22 }
  0x2f   : > { %3998 = sst [smem:[#allocation33_spill]] %s2940_s19  ;;  %s4095_s25 = smov (%p49_p10, %s48_s25), 0 }
  0x30   : > { %3999 = sst [smem:[#allocation34_spill]] %s2944_s20  ;;  %p53_p11 = scmp.ge.s32.totalorder %s4093_s26, 4 }
  0x31   : > { %4000 = sst [smem:[#allocation35_spill]] %s2952_s22  ;;  %s3109_s29 = sadd.s32 %s2952_s22, %s2208_s28 }
  0x32   : > { %4001 = sst [smem:[#allocation36_spill]] %s2956_s23  ;;  %p3970_p12 = scmp.eq.s32.totalorder %s2960_s24, 0 }
  0x33   : > { %4002 = sst [smem:[#allocation37_spill]] %s4095_s25  ;;  %p156_p13 = scmp.ne.s32.totalorder %s2920_s14, %s2916_s13 }
  0x34   : > { %s135_s30 = sld [smem:[#allocation5 + %s3109_s29]]  ;;  %s4097_s27 = smov (!%p53_p11, %s55_s27), %s2956_s23 }
  0x35   : > { %s4099_s26 = smov (%p53_p11, %s4093_s26), 0  ;;  %p57_p0 = scmp.ge.s32.totalorder %s4097_s27, 2 }
  0x36   : > { %4003 = sst [smem:[#allocation38_spill]] %s4099_s26  ;;  %p3122_p1 = por %p156_p13, %p3970_p12 }
  0x37   : > { %s134_s9 = sld [smem:[#allocation6 + %s3109_s29]]  ;;  %s4101_s27 = smov (%p57_p0, %s4097_s27), 0 }
  0x38   : > { %4005 = sst [smem:[#allocation39_spill]] %s4101_s27  ;;  %s2209_s28 = sshll.u32 %s4101_s27, 2 }
  0x39   : > { %s3132_s8 = sld [smem:[#allocation5 + %s3109_s29]]  ;;  %s3136_s7 = sadd.s32 %s2209_s28, %s4099_s26 }
  0x3a   : > { %p136_p2 = scmp.ne.s32.totalorder %s135_s30, 0  ;;  %s140_s4 = sld [smem:[#allocation6 + %s3136_s7]] }
  0x3b   : > { %p3972_p4 = scmp.lt.s32.totalorder %s2960_s24, 16  ;;  %s141_s18 = sld [smem:[#allocation5 + %s3136_s7]] }
  0x3c   : > { %s137_s22 = scalar_select %p136_p2, %s2948_s21, 1 }
  0x3d   : > { %s287_s19 = sand.u32 1, %s2920_s14   ;;  %p3147_p5 = pnand %p3972_p4, %p3122_p1 }
  0x3e   : > { %s2218_s30 = sshll.u32 %s287_s19, 8  ;;  %p2229_p8 = scmp.ge.s32.totalorder %s2960_s24, 1 }
  0x3f   : > { %s2363_s28 = scalar_select %p3122_p1, [#allocation6], [#allocation14] }
  0x40   : > { %s144_s26 = ssub.s32 %s134_s9, %s140_s4  ;;  %s289_s3 = scalar_lea.vmem [#allocation10], %s2218_s30 }
  0x41   : > { %s304_s6 = sshll.u32 %s289_s3, 4  ;;  %p142_p6 = scmp.ne.s32.totalorder %s141_s18, 0  ;;  %s3153_s6 = int_to_ptr.vmem [resolvable:$true] %s304_s6 }
  0x42   : > { %s2364_s19 = scalar_select %p3122_p1, %s3109_s29, 0 }
  0x43   : > { %s143_s1 = scalar_select %p142_p6, %s4095_s25, 1 }
  0x44   : > { %s4103_s28 = smov (!%p3972_p4, %s2363_s28), [#allocation18]  ;;  %s4105_s19 = smov (!%p3972_p4, %s2364_s19), 0 }
  0x45   : > { %s145_s11 = ssub.s32 %s137_s22, %s143_s1  ;;  %s4007_s3 = sadd.s32 1, %s2920_s14 }
  0x46   : > { %s146_s10 = sor.u32 %s145_s11, %s144_s26  ;;  %s292_s18 = sld [smem:[%s4103_s28 + %s4105_s19]] }
  0x47   : > { %p147_p7 = scmp.eq.s32.totalorder %s146_s10, 0  ;;  %p342_p9 = scmp.lt.s32.totalorder %s2960_s24, 17 }
  0x48   : > { %s2365_s1 = scalar_select %p3122_p1, [#allocation5], [#allocation15] }
  0x49   : > { %s3167_s4 = scalar_select %p147_p7, %s2920_s14, %s4007_s3  }
  0x4a   : > { %p3172_p10 = pnand %p2229_p8, %p342_p9  ;;  %s4107_s1 = smov (!%p3972_p4, %s2365_s1), [#allocation19] }
  0x4b   : > { %4008 = sst [smem:[#allocation40_spill]] %s3167_s4  ;;  %s3179_s26 = sadd.s32 4294967295, %s2960_s24  }
  0x4c   : > { %s4009_s10 = scalar_select %p3172_p10, 1, 0 }
  0x4d   : > { %s293_s11 = sld [smem:[%s4107_s1 + %s4105_s19]]  ;;  %s2221_s22 = sshll.u32 %s292_s18, 7 }
  0x4e   : > { %s59_s0 = ssub.s32 %s2956_s23, %s4101_s27  ;;  %p3973_p0 = scmp.ne.s32.totalorder %s2932_s17, %s2928_s16 }
  0x4f   : > { %p3186_p13 = scmp.eq.s32.totalorder %s59_s0, 0  ;;  %s4012_s5 = sld [smem:[#allocation47_spill]] }
  0x50   : > { %p3199_p2 = por %p3970_p12, %p3973_p0  ;;  %s4013_s0 = sand.u32 1, %s2960_s24  }
  0x51   : > { %s4010_s3 = scalar_select %p3186_p13, 1, 0 }
  0x52   : > { %s4011_s18 = scalar_select %p3199_p2, 1, 0 }
  0x53   : > { %p294_p11 = scmp.ne.s32.totalorder %s293_s11, 0  ;;  %p2708_p9 = pneg %p3147_p5 }
  0x55   : > { %s295_s28 = scalar_select %p294_p11, %s2948_s21, 1 }
  0x56   : > { %s2711_s27 = scalar_lea.hbm %s4012_s5, 32768 }
  0x57   : > { %s2220_s4 = sshll.u32 %s295_s28, 1  ;;  %s3212_s28 = scalar_lea.sflag [#allocation11], %s4013_s0 }
  0x58   : > { %s301_s19 = sadd.s32 %s2221_s22, %s2220_s4 }
  0x59   : > { %s2222_s1 = sshll.u32 %s301_s19, 6 }
  0x5a   : > { %s3207_s30 = scalar_lea.hbm %s4012_s5, %s2222_s1 }
  0x5b   : > { %s2706_s4 = scalar_lea.hbm %s3207_s30, 4096  ;;  %p2712_p4 = scmp.lt.s32.totalorder %s3207_s30, %s4012_s5 }
  0x5c   : > { %p2707_p8 = scmp.ne.s32.totalorder %s3207_s30, %s2706_s4  ;;  %p2713_p0 = scmp.lt.s32.totalorder %s2711_s27, %s2706_s4 }
  0x5e   : > { %p2709_p11 = pnand %p2708_p9, %p2707_p8  ;;  %p2714_p3 = por %p2713_p0, %p2712_p4 }
  0x60   : > { %p2710_p12 = pneg %p2709_p11 }
  0x62   : > { %p2715_p7 = pnand %p2714_p3, %p2710_p12 }
  0x64   : > { %2718 = shalt.err (!%p2715_p7)
}
  0x65   : > { %s2719_s11 = scalar_lea.vmem %s3153_s6, 4096  ;;  %s2964_s0 = smov [#allocation10]  }
  0x66   : > { %p2720_p6 = scmp.ne.s32.totalorder %s3153_s6, %s2719_s11  ;;  %s2724_s14 = sshll.u32 %s2964_s0, 4  ;;  %s2725_s14 = int_to_ptr.vmem [resolvable:$false] %s2724_s14 }
  0x67   : > { %s2726_s22 = scalar_lea.vmem %s2725_s14, 8192  ;;  %p2727_p11 = scmp.lt.s32.totalorder %s3153_s6, %s2725_s14 }
  0x68   : > { %p2722_p1 = pnand %p2720_p6, %p2708_p9  ;;  %p2728_p10 = scmp.lt.s32.totalorder %s2726_s22, %s2719_s11 }
  0x6a   : > { %p2723_p8 = pneg %p2722_p1  ;;  %p2729_p2 = por %p2728_p10, %p2727_p11 }
  0x6c   : > { %p2730_p13 = pnand %p2729_p2, %p2723_p8 }
  0x6e   : > { %2733 = shalt.err (!%p2730_p13)
}
  0x6f   : > { %s3977_s27 = smov 256   ;;  %s3975_s14 = smov 128  }
  0x70   : > { %s3976_s4 = smov 8   ;;  %s4014_s19 = sadd.s32 1, %s2932_s17 }
  0x71   : > { %2388 = dma.hbm_to_vmem [thread:$0]  (!%p3147_p5), %s3207_s30, 4096, %s3153_s6, %s3212_s28, %s3977_s27, %s3975_s14, %s3976_s4  }
  0x72   : > { %p4015_p12 = scmp.ne.s32.totalorder %s4010_s3, 0  ;;  %p4017_p3 = scmp.ne.s32.totalorder %s2928_s16, %s2924_s15 }
  0x73   : > { %p4018_p4 = scmp.eq.s32.totalorder %s3179_s26, 0  ;;  %p4021_p0 = scmp.ne.s32.totalorder %s2916_s13, %s2912_s12 }
  0x74   : > { %s3241_s9 = scalar_select %p4015_p12, %s2932_s17, %s4014_s19  }
  0x75   : > { %p3248_p10 = por %p4018_p4, %p4017_p3  ;;  %p4020_p13 = pmov %p4018_p4 }
  0x76   : > { %4016 = sst [smem:[#allocation41_spill]] %s3241_s9  ;;  %p4023_p2 = scmp.ne.s32.totalorder %s2932_s17, %s2928_s16 }
  0x77   : > { %s4019_s1 = scalar_select %p3248_p10, 1, 0 }
  0x78   : > { %p3257_p1 = por %p4021_p0, %p4020_p13  ;;  %p4024_p6 = scmp.eq.s32.totalorder %s3179_s26, 15 }
  0x79   : > { %s4026_s20 = sadd.s32 4294967294, %s2960_s24   ;;  %s255_s30 = sand.u32 1, %s2932_s17  }
  0x7a   : > { %s4022_s11 = scalar_select %p3257_p1, 1, 0 }
  0x7b   : > { %p3266_p7 = por %p4024_p6, %p4023_p2  ;;  %p232_p5 = scmp.eq.s32.totalorder %s4026_s20, 15 }
  0x7c   : > { %s2341_s3 = sshll.u32 %s2956_s23, 12  ;;  %p4027_p9 = pmov %p4017_p3 }
  0x7d   : > { %s4025_s6 = scalar_select %p3266_p7, 1, 0 }
  0x7e   : > { %p3277_p8 = por %p232_p5, %p4027_p9  ;;  %s2214_s12 = sshll.u32 %s255_s30, 8 }
  0x7f   : > { %s4030_s2 = sld [smem:[#allocation44_spill]]  ;;  %p4031_p11 = scmp.ne.s32.totalorder %s4011_s18, 0 }
  0x80   : > { %s4028_s0 = scalar_select %p3277_p8, 1, 0 }
  0x81   : > { %p4032_p12 = scmp.lt.s32.totalorder %s2960_s24, 16  ;;  %s259_s20 = scalar_lea.vmem [#allocation7], %s2214_s12 }
  0x82   : > { %4029 = sst [smem:[#allocation42_spill]] %s4028_s0  ;;  %s267_s27 = sshll.u32 %s259_s20, 4  ;;  %s268_s27 = int_to_ptr.vmem [resolvable:$true] %s267_s27 }
  0x83   : > { %p3288_p3 = pnand %p4032_p12, %p4031_p11  ;;  %s256_s5 = scalar_lea.sflag [#allocation8], %s255_s30 }
  0x84   : > { %s2747_s23 = scalar_lea.vmem %s268_s27, 4096  ;;  %s2968_s9 = smov [#allocation7]  }
  0x85   : > { %s266_s14 = scalar_lea.hbm %s4030_s2, %s2341_s3  ;;  %p2736_p4 = pneg %p3288_p3 }
  0x86   : > { %p2748_p13 = scmp.ne.s32.totalorder %s268_s27, %s2747_s23  ;;  %s2752_s22 = sshll.u32 %s2968_s9, 4  ;;  %s2753_s22 = int_to_ptr.vmem [resolvable:$false] %s2752_s22 }
  0x87   : > { %s2754_s18 = scalar_lea.vmem %s2753_s22, 8192  ;;  %p2755_p6 = scmp.lt.s32.totalorder %s268_s27, %s2753_s22 }
  0x88   : > { %p2750_p0 = pnand %p2748_p13, %p2736_p4  ;;  %p2756_p5 = scmp.lt.s32.totalorder %s2754_s18, %s2747_s23 }
  0x8a   : > { %p2751_p2 = pneg %p2750_p0  ;;  %p2757_p9 = por %p2756_p5, %p2755_p6 }
  0x8c   : > { %p2758_p11 = pnand %p2757_p9, %p2751_p2 }
  0x8e   : > { %2761 = shalt.err (!%p2758_p11)
}
  0x8f   : > { %s2969_s3 = smov 16   ;;  %s4034_s12 = smov 256  }
  0x90   : > { %s4035_s30 = sld [smem:[#allocation28_spill]]  ;;  %p176_p12 = scmp.ne.s32.totalorder %s3132_s8, 0 }
  0x91   : > { %s4036_s19 = sld [smem:[#allocation29_spill]]  ;;  %p4038_p0 = scmp.eq.s32.totalorder %s3179_s26, 0 }
  0x92   : > { %s4037_s20 = sld [smem:[#allocation27_spill]]  ;;  %p4040_p6 = scmp.eq.s32.totalorder %s2960_s24, 0 }
  0x93   : > { %2381 = dma.hbm_to_vmem [thread:$0]  (!%p3288_p3), %s266_s14, 4096, %s268_s27, %s256_s5, %s4034_s12, %s4034_s12, %s2969_s3  }
  0x94   : > { %s174_s23 = sld [smem:[#allocation6 + %s3109_s29]]  ;;  %p4042_p9 = scmp.lt.s32.totalorder %s2960_s24, 16 }
  0x95   : > { %s180_s4 = sld [smem:[#allocation6 + %s3136_s7]] }
  0x96   : > { %s181_s9 = sld [smem:[#allocation5 + %s3136_s7]] }
  0x97   : > { %p196_p4 = scmp.ne.s32.totalorder %s4036_s19, %s4035_s30  ;;  %s316_s2 = sand.u32 1, %s4036_s19  }
  0x98   : > { %p202_p13 = scmp.ne.s32.totalorder %s4035_s30, %s4037_s20  ;;  %s189_s30 = sadd.s32 1, %s4036_s19 }
  0x99   : > { %p3314_p5 = por %p196_p4, %p4040_p6  ;;  %s4048_s0 = sld [smem:[#allocation48_spill]] }
  0x9a   : > { %p3308_p2 = por %p202_p13, %p4038_p0  ;;  %p4046_p13 = pmov %p4042_p9 }
  0x9b   : > { %s177_s5 = scalar_select %p176_p12, %s2948_s21, 1 }
  0x9c   : > { %s4039_s22 = scalar_select %p3308_p2, 1, 0 }
  0x9d   : > { %s2368_s7 = scalar_select %p3314_p5, [#allocation6], [#allocation16] }
  0x9e   : > { %p182_p3 = scmp.ne.s32.totalorder %s181_s9, 0  ;;  %p3325_p11 = pnand %p4042_p9, %p3314_p5 }
  0x9f   : > { %s184_s27 = ssub.s32 %s174_s23, %s180_s4  ;;  %s4109_s29 = smov (!%p3314_p5, %s3109_s29), 0 }
  0xa0   : > { %s183_s14 = scalar_select %p182_p3, %s4095_s25, 1 }
  0xa1   : > { %p4044_p12 = pmov %p4042_p9  ;;  %s4113_s29 = smov (!%p4046_p13, %s4109_s29), 0 }
  0xa2   : > { %s185_s3 = ssub.s32 %s177_s5, %s183_s14  ;;  %p4047_p0 = pmov %p4042_p9 }
  0xa3   : > { %s186_s12 = sor.u32 %s185_s3, %s184_s27  ;;  %s4111_s7 = smov (!%p4044_p12, %s2368_s7), [#allocation20] }
  0xa4   : > { %p187_p4 = scmp.eq.s32.totalorder %s186_s12, 0  ;;  %s321_s23 = sld [smem:[%s4111_s7 + %s4113_s29]] }
  0xa5   : > { %s2370_s9 = scalar_select %p3314_p5, [#allocation5], [#allocation17] }
  0xa6   : > { %s3337_s20 = scalar_select %p187_p4, %s4036_s19, %s189_s30  }
  0xa7   : > { %s4115_s9 = smov (!%p4047_p0, %s2370_s9), [#allocation21]  ;;  %s2223_s25 = sshll.u32 %s316_s2, 8 }
  0xa8   : > { %4045 = sst [smem:[#allocation43_spill]] %s3337_s20  ;;  %s318_s27 = scalar_lea.vmem [#allocation12], %s2223_s25 }
  0xa9   : > { %s322_s4 = sld [smem:[%s4115_s9 + %s4113_s29]]  ;;  %s334_s14 = sshll.u32 %s318_s27, 4  ;;  %s3347_s14 = int_to_ptr.vmem [resolvable:$true] %s334_s14 }
  0xaa   : > { %s2227_s5 = sshll.u32 %s321_s23, 7  ;;  %p2764_p3 = pneg %p3325_p11 }
  0xab   : > { %s2767_s7 = scalar_lea.hbm %s4048_s0, 32768 }
  0xaf   : > { %p323_p6 = scmp.ne.s32.totalorder %s322_s4, 0 }
  0xb1   : > { %s324_s3 = scalar_select %p323_p6, %s2948_s21, 1 }
  0xb3   : > { %s2342_s12 = sshll.u32 %s324_s3, 6 }
  0xb4   : > { %s331_s17 = sadd.s32 %s2342_s12, %s2227_s5 }
  0xb5   : > { %s2228_s30 = sshll.u32 %s331_s17, 6 }
  0xb6   : > { %s3352_s19 = scalar_lea.hbm %s4048_s0, %s2228_s30 }
  0xb7   : > { %s2762_s29 = scalar_lea.hbm %s3352_s19, 4096  ;;  %p2768_p12 = scmp.lt.s32.totalorder %s3352_s19, %s4048_s0 }
  0xb8   : > { %p2763_p5 = scmp.ne.s32.totalorder %s3352_s19, %s2762_s29  ;;  %p2769_p13 = scmp.lt.s32.totalorder %s2767_s7, %s2762_s29 }
  0xba   : > { %p2765_p9 = pnand %p2764_p3, %p2763_p5  ;;  %p2770_p0 = por %p2769_p13, %p2768_p12 }
  0xbc   : > { %p2766_p4 = pneg %p2765_p9 }
  0xbe   : > { %p2771_p6 = pnand %p2770_p0, %p2766_p4 }
  0xc0   : > { %2774 = shalt.err (!%p2771_p6)
}
  0xc1   : > { %s2775_s20 = scalar_lea.vmem %s3347_s14, 4096  ;;  %s2970_s23 = smov [#allocation12]  }
  0xc2   : > { %p2776_p8 = scmp.ne.s32.totalorder %s3347_s14, %s2775_s20  ;;  %s2780_s4 = sshll.u32 %s2970_s23, 4  ;;  %s2781_s4 = int_to_ptr.vmem [resolvable:$false] %s2780_s4 }
  0xc3   : > { %s2782_s5 = scalar_lea.vmem %s2781_s4, 8192  ;;  %p2783_p9 = scmp.lt.s32.totalorder %s3347_s14, %s2781_s4 }
  0xc4   : > { %p2778_p7 = pnand %p2776_p8, %p2764_p3  ;;  %p2784_p2 = scmp.lt.s32.totalorder %s2782_s5, %s2775_s20 }
  0xc6   : > { %p2779_p5 = pneg %p2778_p7  ;;  %p2785_p1 = por %p2784_p2, %p2783_p9 }
  0xc8   : > { %p2786_p10 = pnand %p2785_p1, %p2779_p5 }
  0xca   : > { %2789 = shalt.err (!%p2786_p10)
}
  0xcb   : > { %s4049_s27 = smov 8   ;;  %s4050_s3 = smov 128  }
  0xcc   : > { %2395 = dma.hbm_to_vmem [thread:$0]  (!%p3325_p11), %s3352_s19, 4096, %s3347_s14, %s3212_s28, %s4050_s3, %s4050_s3, %s4049_s27  }
  0xcd   : > { %p4051_p7 = scmp.ne.s32.totalorder %s4009_s10, 0 }
  0xce   : > { %s3379_s12 = sand.u32 (!%p4051_p7), 1, %s2928_s16   ;;  %p4052_p10 = scmp.ne.s32.totalorder (!%p4051_p7), %s4019_s1, 0 }
  0xcf   : > { %346 = sbr.rel (%p4051_p7) target bundleno = 1072 (0x430), region = 40  ;;  %s2230_s30 = sshll.u32 (!%p4051_p7), %s3379_s12, 8 }
  0xd0   : > { %s349_s18 = scalar_lea.sflag (!%p4051_p7), [#allocation8], %s3379_s12  ;;  %s3383_s29 = scalar_lea.vmem (!%p4051_p7), [#allocation7], %s2230_s30 }
  0xd4   : > { %2883 = dma.done.wait (%p4052_p10), %s349_s18, 4096  }
  0xd5   : > { %2885 = vsyncadd (%p4052_p10), %s349_s18, 4294963200  ;;  %s357_s10 = sand.u32 1, %s3179_s26   ;;  %s359_s28 = sand.u32 1, %s2916_s13  }
  0xd6   : > { %s2231_s8 = sshll.u32 %s359_s28, 8  ;;  %s358_s14 = scalar_lea.sflag [#allocation11], %s357_s10 }
  0xd7   : > { %s3391_s19 = scalar_lea.vmem [#allocation10], %s2231_s8  ;;  %p4053_p1 = scmp.ne.s32.totalorder %s4022_s11, 0 }
  0xd9   : > { %2887 = dma.done.wait (%p4053_p1), %s358_s14, 4096  }
  0xda   : > { %2889 = vsyncadd (%p4053_p1), %s358_s14, 4294963200  ;;  %s4054_s2 = sld [smem:[#allocation28_spill]]  ;;  %p4055_p8 = scmp.ne.s32.totalorder %s4039_s22, 0 }
  0xe0   : > { %s368_s25 = sand.u32 1, %s4054_s2  }
  0xe1   : > { %s2232_s7 = sshll.u32 %s368_s25, 8 }
  0xe2   : > { %s3398_s1 = scalar_lea.vmem [#allocation12], %s2232_s7 }
  0xe3   : > { %2891 = dma.done.wait (%p4055_p8), %s358_s14, 4096  }
  0xe4   : > { %2893 = vsyncadd (%p4055_p8), %s358_s14, 4294963200  ;;  %s4056_s26 = sld [smem:[#allocation34_spill]]  ;;  %s3413_s27 = scalar_lea.vmem [#allocation13], %s2230_s30 }
  0xe5   : > { %s4057_s9 = sld [smem:[#allocation33_spill]] }
  0xe6   : > { %s4058_s17 = sld [smem:[#allocation32_spill]] }
  0xe7   : > { %s4059_s4 = sld [smem:[#allocation46_spill]] }
  0xea   : > { %p413_p2 = scmp.lt.s32.totalorder %s4056_s26, 1 }
  0xeb   : > { %p433_p11 = scmp.eq.s32.totalorder %s4057_s9, 0 }
  0xec   : > { %p434_p3 = scmp.eq.s32.totalorder %s4058_s17, 0  ;;  %s4117_s26 = smov (!%p413_p2, %s4056_s26), 1 }
  0xed   : > { %s2343_s11 = sshll.u32 %s4117_s26, 7 }
  0xee   : > { %p435_p4 = pnand %p434_p3, %p433_p11  ;;  %s3411_s5 = scalar_lea.vmem %s4059_s4, %s2343_s11 }
  0xef   : > { %s4060_s30 = sld [smem:[#allocation45_spill]] (!%p435_p4) }
  0xf0   : > { %438 = sbr.rel (%p435_p4) target bundleno = 442 (0x1ba), region = 56 }
  0xf5   : > { %v3416_v0 = vld [vmem:[%s3383_s29 + $0x20] sm:$0xff]  ;;  %v3419_v1 = vld [vmem:[%s3383_s29 + $0x28] sm:$0xff]  ;;  %v3434_v7 = vld [vmem:[%s3383_s29 + $0x30] sm:$0xff] }
  0xf6   : > { %v3422_v2 = vld [vmem:[%s3383_s29] sm:$0xff]  ;;  %v475_v3 = vmul.f32 %v3416_v0, %v3416_v0  ;;  %v476_v4 = vmul.f32 %v3419_v1, %v3419_v1  ;;  %v3429_v5 = vld [vmem:[%s3383_s29 + $0x8] sm:$0xff]  ;;  %v3437_v8 = vld [vmem:[%s3383_s29 + $0x38] sm:$0xff]  ;;  %v477_v10 = vmul.f32 %v3434_v7, %v3434_v7 }
  0xf7   : > { %v471_v6 = vmul.f32 %v3422_v2, %v3422_v2  ;;  %v472_v9 = vmul.f32 %v3429_v5, %v3429_v5  ;;  %v478_v11 = vmul.f32 %v3437_v8, %v3437_v8  ;;  %v3446_v12 = vld [vmem:[%s3383_s29 + $0x10] sm:$0xff]  ;;  %v3449_v13 = vld [vmem:[%s3383_s29 + $0x18] sm:$0xff]  ;;  %v3462_v19 = vld [vmem:[%s3383_s29 + $0x40] sm:$0xff] }
  0xf8   : > { %v3452_v14 = vld [vmem:[%s3383_s29 + $0x50] sm:$0xff]  ;;  %v509_v15 = vadd.f32 %v476_v4, %v475_v3  ;;  %v473_v16 = vmul.f32 %v3446_v12, %v3446_v12  ;;  %v474_v17 = vmul.f32 %v3449_v13, %v3449_v13  ;;  %v3459_v18 = vld [vmem:[%s3383_s29 + $0x58] sm:$0xff]  ;;  %v3465_v20 = vld [vmem:[%s3383_s29 + $0x48] sm:$0xff]  ;;  %v479_v26 = vmul.f32 %v3462_v19, %v3462_v19 }
  0xf9   : > { %v503_v21 = vadd.f32 %v472_v9, %v471_v6  ;;  %v512_v22 = vadd.f32 %v478_v11, %v477_v10  ;;  %v481_v23 = vmul.f32 %v3452_v14, %v3452_v14  ;;  %v482_v24 = vmul.f32 %v3459_v18, %v3459_v18  ;;  %v3476_v28 = vld [vmem:[%s3383_s29 + $0x70] sm:$0xff]  ;;  %v3479_v29 = vld [vmem:[%s3383_s29 + $0x78] sm:$0xff]  ;;  %v3482_v30 = vld [vmem:[%s3383_s29 + $0x60] sm:$0xff] }
  0xfa   : > { %510 = vadd.xlane.f32.xlu1 %v509_v15  ;;  %v506_v25 = vadd.f32 %v474_v17, %v473_v16  ;;  %v480_v27 = vmul.f32 %v3465_v20, %v3465_v20  ;;  %v3485_v31 = vld [vmem:[%s3383_s29 + $0x68] sm:$0xff]  ;;  %v485_v33 = vmul.f32 %v3476_v28, %v3476_v28  ;;  %v486_v34 = vmul.f32 %v3479_v29, %v3479_v29  ;;  %v3496_v38 = vld [vmem:[%s3383_s29 + $0x90] sm:$0xff]  ;;  %v3499_v39 = vld [vmem:[%s3383_s29 + $0x98] sm:$0xff] }
  0xfb   : > { %504 = vadd.xlane.f32.xlu0 %v503_v21  ;;  %v518_v32 = vadd.f32 %v482_v24, %v481_v23  ;;  %v483_v36 = vmul.f32 %v3482_v30, %v3482_v30  ;;  %v484_v37 = vmul.f32 %v3485_v31, %v3485_v31  ;;  %v3502_v40 = vld [vmem:[%s3383_s29 + $0x80] sm:$0xff]  ;;  %v3505_v41 = vld [vmem:[%s3383_s29 + $0x88] sm:$0xff]  ;;  %v489_v43 = vmul.f32 %v3496_v38, %v3496_v38  ;;  %v3516_v48 = vld [vmem:[%s3383_s29 + $0xb0] sm:$0xff] }
  0xfc   : > { %v515_v35 = vadd.f32 %v480_v27, %v479_v26  ;;  %v524_v42 = vadd.f32 %v486_v34, %v485_v33  ;;  %v490_v44 = vmul.f32 %v3499_v39, %v3499_v39  ;;  %v487_v46 = vmul.f32 %v3502_v40, %v3502_v40  ;;  %v3519_v49 = vld [vmem:[%s3383_s29 + $0xb8] sm:$0xff]  ;;  %v3522_v50 = vld [vmem:[%s3383_s29 + $0xa0] sm:$0xff]  ;;  %v3525_v51 = vld [vmem:[%s3383_s29 + $0xa8] sm:$0xff] }
  0xfd   : > { %v521_v45 = vadd.f32 %v484_v37, %v483_v36  ;;  %v488_v47 = vmul.f32 %v3505_v41, %v3505_v41  ;;  %v493_v53 = vmul.f32 %v3516_v48, %v3516_v48  ;;  %v494_v54 = vmul.f32 %v3519_v49, %v3519_v49  ;;  %v3536_v58 = vld [vmem:[%s3383_s29 + $0xd0] sm:$0xff]  ;;  %v3539_v59 = vld [vmem:[%s3383_s29 + $0xd8] sm:$0xff]  ;;  %v3542_v60 = vld [vmem:[%s3383_s29 + $0xc0] sm:$0xff] }
  0xfe   : > { %513 = vadd.xlane.f32.xlu1 %v512_v22  ;;  %v530_v52 = vadd.f32 %v490_v44, %v489_v43  ;;  %v491_v56 = vmul.f32 %v3522_v50, %v3522_v50  ;;  %v492_v57 = vmul.f32 %v3525_v51, %v3525_v51  ;;  %v3545_v61 = vld [vmem:[%s3383_s29 + $0xc8] sm:$0xff]  ;;  %v497_v63 = vmul.f32 %v3536_v58, %v3536_v58  ;;  %v3556_v10 = vld [vmem:[%s3383_s29 + $0xf0] sm:$0xff]  ;;  %v3559_v11 = vld [vmem:[%s3383_s29 + $0xf8] sm:$0xff] }
  0xff   : > { %507 = vadd.xlane.f32.xlu0 %v506_v25  ;;  %v527_v55 = vadd.f32 %v488_v47, %v487_v46  ;;  %v536_v62 = vadd.f32 %v494_v54, %v493_v53  ;;  %v498_v3 = vmul.f32 %v3539_v59, %v3539_v59  ;;  %v495_v6 = vmul.f32 %v3542_v60, %v3542_v60  ;;  %v3562_v15 = vld [vmem:[%s3383_s29 + $0xe0] sm:$0xff]  ;;  %v3565_v16 = vld [vmem:[%s3383_s29 + $0xe8] sm:$0xff] }
 0x100   : > { %v533_v4 = vadd.f32 %v492_v57, %v491_v56  ;;  %v496_v9 = vmul.f32 %v3545_v61, %v3545_v61  ;;  %v501_v21 = vmul.f32 %v3556_v10, %v3556_v10  ;;  %v502_v22 = vmul.f32 %v3559_v11, %v3559_v11 }
 0x101   : > { %v542_v17 = vadd.f32 %v498_v3, %v497_v63  ;;  %v499_v24 = vmul.f32 %v3562_v15, %v3562_v15  ;;  %v500_v25 = vmul.f32 %v3565_v16, %v3565_v16  ;;  %v634_v44 = vlaneseq }
 0x102   : > { %519 = vadd.xlane.f32.xlu1 %v518_v32  ;;  %v539_v23 = vadd.f32 %v496_v9, %v495_v6  ;;  %v548_v26 = vadd.f32 %v502_v22, %v501_v21  ;;  %v2971_v32 = vmov 0.0   ;;  %v632_v22 = vld [vmem:[%s4060_s30] sm:$0x3] }
 0x103   : > { %516 = vadd.xlane.f32.xlu0 %v515_v35  ;;  %v545_v27 = vadd.f32 %v500_v25, %v499_v24  ;;  %788 = vst [vmem:[#allocation3 + $0xa8] sm:$0xff] %v2971_v32  ;;  %789 = vst [vmem:[#allocation3 + $0x68] sm:$0xff] %v2971_v32 }
 0x104   : > { %790 = vst [vmem:[#allocation3 + $0x10] sm:$0xff] %v2971_v32  ;;  %791 = vst [vmem:[#allocation3 + $0xc0] sm:$0xff] %v2971_v32 }
 0x105   : > { %792 = vst [vmem:[#allocation3 + $0xc8] sm:$0xff] %v2971_v32  ;;  %793 = vst [vmem:[#allocation3 + $0xb0] sm:$0xff] %v2971_v32 }
 0x106   : > { %525 = vadd.xlane.f32.xlu1 %v524_v42  ;;  %794 = vst [vmem:[#allocation3 + $0x70] sm:$0xff] %v2971_v32  ;;  %795 = vst [vmem:[#allocation3 + $0x38] sm:$0xff] %v2971_v32 }
 0x107   : > { %522 = vadd.xlane.f32.xlu0 %v521_v45  ;;  %796 = vst [vmem:[#allocation3 + $0x48] sm:$0xff] %v2971_v32  ;;  %797 = vst [vmem:[#allocation3 + $0xf8] sm:$0xff] %v2971_v32 }
 0x108   : > { %798 = vst [vmem:[#allocation3 + $0x78] sm:$0xff] %v2971_v32  ;;  %799 = vst [vmem:[#allocation3 + $0x88] sm:$0xff] %v2971_v32 }
 0x109   : > { %800 = vst [vmem:[#allocation3 + $0xf0] sm:$0xff] %v2971_v32  ;;  %801 = vst [vmem:[#allocation3 + $0x18] sm:$0xff] %v2971_v32 }
 0x10a   : > { %531 = vadd.xlane.f32.xlu1 %v530_v52  ;;  %802 = vst [vmem:[#allocation3 + $0x30] sm:$0xff] %v2971_v32  ;;  %803 = vst [vmem:[#allocation3 + $0x50] sm:$0xff] %v2971_v32 }
 0x10b   : > { %528 = vadd.xlane.f32.xlu0 %v527_v55  ;;  %804 = vst [vmem:[#allocation3 + $0xb8] sm:$0xff] %v2971_v32  ;;  %805 = vst [vmem:[#allocation3 + $0xd0] sm:$0xff] %v2971_v32  ;;  %v635_v55 = vshrl.u32 %v634_v44, 7 }
 0x10c   : > { %806 = vst [vmem:[#allocation3 + $0xd8] sm:$0xff] %v2971_v32  ;;  %807 = vst [vmem:[#allocation3 + $0x58] sm:$0xff] %v2971_v32 }
 0x10d   : > { %808 = vst [vmem:[#allocation3 + $0x80] sm:$0xff] %v2971_v32  ;;  %809 = vst [vmem:[#allocation3 + $0x40] sm:$0xff] %v2971_v32  ;;  %v636_v6 = vsub.s32 0, %v635_v55  ;;  %v640_v9 = vsub.s32 1, %v635_v55 }
 0x10e   : > { %537 = vadd.xlane.f32.xlu1 %v536_v62  ;;  %810 = vst [vmem:[#allocation3 + $0x28] sm:$0xff] %v2971_v32  ;;  %811 = vst [vmem:[#allocation3] sm:$0xff] %v2971_v32 }
 0x10f   : > { %534 = vadd.xlane.f32.xlu0 %v533_v4  ;;  %812 = vst [vmem:[#allocation3 + $0x90] sm:$0xff] %v2971_v32  ;;  %813 = vst [vmem:[#allocation3 + $0xe8] sm:$0xff] %v2971_v32 }
 0x110   : > { %814 = vst [vmem:[#allocation3 + $0xa0] sm:$0xff] %v2971_v32  ;;  %815 = vst [vmem:[#allocation3 + $0x20] sm:$0xff] %v2971_v32 }
 0x111   : > { %816 = vst [vmem:[#allocation3 + $0x8] sm:$0xff] %v2971_v32  ;;  %817 = vst [vmem:[#allocation3 + $0xe0] sm:$0xff] %v2971_v32 }
 0x112   : > { %543 = vadd.xlane.f32.xlu1 %v542_v17  ;;  %818 = vst [vmem:[#allocation3 + $0x60] sm:$0xff] %v2971_v32  ;;  %819 = vst [vmem:[#allocation3 + $0x98] sm:$0xff] %v2971_v32  ;;  %v3580_v32 = vrot.slane %v632_v22, %v640_v9 }
 0x113   : > { %540 = vadd.xlane.f32.xlu0 %v539_v23 }
 0x116   : > { %549 = vadd.xlane.f32.xlu1 %v548_v26 }
 0x117   : > { %546 = vadd.xlane.f32.xlu0 %v545_v27  ;;  %v3578_v27 = vrot.slane %v632_v22, %v636_v6 }
 0x183   : > { %v511_v33 = vpop.xlane.xlu1 %510 }
 0x184   : > { %v554_v34 = vmul.f32 0.00390625, %v511_v33  ;;  %v505_v35 = vpop.xlane.xlu0 %504 }
 0x185   : > { %v552_v36 = vmul.f32 0.00390625, %v505_v35 }
 0x186   : > { %v570_v37 = vadd.f32 1e-06, %v554_v34 }
 0x187   : > { %v568_v42 = vadd.f32 1e-06, %v552_v36  ;;  %v514_v43 = vpop.xlane.xlu1 %513 }
 0x188   : > { %2539 = vrsqrt.f32 %v570_v37  ;;  %v555_v45 = vmul.f32 0.00390625, %v514_v43  ;;  %v508_v46 = vpop.xlane.xlu0 %507 }
 0x189   : > { %2541 = vrsqrt.f32 %v568_v42  ;;  %v553_v47 = vmul.f32 0.00390625, %v508_v46 }
 0x18a   : > { %v571_v52 = vadd.f32 1e-06, %v555_v45 }
 0x18b   : > { %v569_v53 = vadd.f32 1e-06, %v553_v47  ;;  %v520_v54 = vpop.xlane.xlu1 %519 }
 0x18c   : > { %2543 = vrsqrt.f32 %v571_v52  ;;  %v557_v56 = vmul.f32 0.00390625, %v520_v54  ;;  %v517_v57 = vpop.xlane.xlu0 %516 }
 0x18d   : > { %2545 = vrsqrt.f32 %v569_v53  ;;  %v556_v62 = vmul.f32 0.00390625, %v517_v57 }
 0x18e   : > { %v573_v63 = vadd.f32 1e-06, %v557_v56 }
 0x18f   : > { %v572_v3 = vadd.f32 1e-06, %v556_v62  ;;  %v526_v4 = vpop.xlane.xlu1 %525 }
 0x190   : > { %2547 = vrsqrt.f32 %v573_v63  ;;  %v559_v17 = vmul.f32 0.00390625, %v526_v4  ;;  %v523_v21 = vpop.xlane.xlu0 %522 }
 0x191   : > { %2549 = vrsqrt.f32 %v572_v3  ;;  %v558_v23 = vmul.f32 0.00390625, %v523_v21 }
 0x192   : > { %v575_v24 = vadd.f32 1e-06, %v559_v17 }
 0x193   : > { %v574_v25 = vadd.f32 1e-06, %v558_v23  ;;  %v532_v26 = vpop.xlane.xlu1 %531 }
 0x194   : > { %2551 = vrsqrt.f32 %v575_v24  ;;  %v561_v33 = vmul.f32 0.00390625, %v532_v26  ;;  %v529_v34 = vpop.xlane.xlu0 %528 }
 0x195   : > { %v2540_v35 = vpop.eup %2539  ;;  %2553 = vrsqrt.f32 %v574_v25  ;;  %v560_v36 = vmul.f32 0.00390625, %v529_v34 }
 0x196   : > { %v2542_v37 = vpop.eup %2541  ;;  %v604_v42 = vmul.f32 %v2540_v35, %v3416_v0  ;;  %v605_v43 = vmul.f32 %v2540_v35, %v3419_v1  ;;  %v577_v44 = vadd.f32 1e-06, %v561_v33 }
 0x197   : > { %v600_v45 = vmul.f32 %v2542_v37, %v3422_v2  ;;  %v601_v46 = vmul.f32 %v2542_v37, %v3429_v5  ;;  %v576_v47 = vadd.f32 1e-06, %v560_v36  ;;  %v538_v52 = vpop.xlane.xlu1 %537 }
 0x198   : > { %v648_v53 = vmul.f32 %v3578_v27, %v604_v42  ;;  %v649_v54 = vmul.f32 %v3580_v32, %v605_v43  ;;  %2555 = vrsqrt.f32 %v577_v44  ;;  %v563_v55 = vmul.f32 0.00390625, %v538_v52  ;;  %v535_v56 = vpop.xlane.xlu0 %534 }
 0x199   : > { %v2544_v57 = vpop.eup %2543  ;;  %v644_v62 = vmul.f32 %v3578_v27, %v600_v45  ;;  %v645_v0 = vmul.f32 %v3580_v32, %v601_v46  ;;  %2557 = vrsqrt.f32 %v576_v47  ;;  %v562_v1 = vmul.f32 0.00390625, %v535_v56 }
 0x19a   : > { %v2546_v63 = vpop.eup %2545  ;;  %v2346_v2 = vpack.c.bf16 %v649_v54, %v648_v53  ;;  %v606_v5 = vmul.f32 %v2544_v57, %v3434_v7  ;;  %v607_v3 = vmul.f32 %v2544_v57, %v3437_v8  ;;  %v579_v4 = vadd.f32 1e-06, %v563_v55 }
 0x19b   : > { %v2344_v6 = vpack.c.bf16 %v645_v0, %v644_v62  ;;  %v602_v9 = vmul.f32 %v2546_v63, %v3446_v12  ;;  %v603_v17 = vmul.f32 %v2546_v63, %v3449_v13  ;;  %v578_v21 = vadd.f32 1e-06, %v562_v1  ;;  %v544_v22 = vpop.xlane.xlu1 %543 }
 0x19c   : > { %774 = vst [vmem:[#allocation2 + $0x58] sm:$0xff] %v2346_v2  ;;  %v650_v23 = vmul.f32 %v3578_v27, %v606_v5  ;;  %v651_v24 = vmul.f32 %v3580_v32, %v607_v3  ;;  %2559 = vrsqrt.f32 %v579_v4  ;;  %v565_v25 = vmul.f32 0.00390625, %v544_v22  ;;  %v541_v26 = vpop.xlane.xlu0 %540 }
 0x19d   : > { %v2548_v33 = vpop.eup %2547  ;;  %772 = vst [vmem:[#allocation2 + $0x30] sm:$0xff] %v2344_v6  ;;  %v646_v7 = vmul.f32 %v3578_v27, %v602_v9  ;;  %v647_v8 = vmul.f32 %v3580_v32, %v603_v17  ;;  %2561 = vrsqrt.f32 %v578_v21  ;;  %v564_v12 = vmul.f32 0.00390625, %v541_v26 }
 0x19e   : > { %v2550_v34 = vpop.eup %2549  ;;  %v2347_v13 = vpack.c.bf16 %v651_v24, %v650_v23  ;;  %v610_v35 = vmul.f32 %v2548_v33, %v3452_v14  ;;  %v611_v36 = vmul.f32 %v2548_v33, %v3459_v18  ;;  %v581_v37 = vadd.f32 1e-06, %v565_v25 }
 0x19f   : > { %v2345_v42 = vpack.c.bf16 %v647_v8, %v646_v7  ;;  %v608_v43 = vmul.f32 %v2550_v34, %v3462_v19  ;;  %v609_v44 = vmul.f32 %v2550_v34, %v3465_v20  ;;  %v580_v45 = vadd.f32 1e-06, %v564_v12  ;;  %v550_v46 = vpop.xlane.xlu1 %549 }
 0x1a0   : > { %775 = vst [vmem:[#allocation2 + $0x18] sm:$0xff] %v2347_v13  ;;  %v654_v47 = vmul.f32 %v3578_v27, %v610_v35  ;;  %v655_v52 = vmul.f32 %v3580_v32, %v611_v36  ;;  %2563 = vrsqrt.f32 %v581_v37  ;;  %v567_v53 = vmul.f32 0.00390625, %v550_v46  ;;  %v547_v54 = vpop.xlane.xlu0 %546 }
 0x1a1   : > { %v2552_v55 = vpop.eup %2551  ;;  %773 = vst [vmem:[#allocation2] sm:$0xff] %v2345_v42  ;;  %v652_v14 = vmul.f32 %v3578_v27, %v608_v43  ;;  %v653_v18 = vmul.f32 %v3580_v32, %v609_v44  ;;  %2565 = vrsqrt.f32 %v580_v45  ;;  %v566_v19 = vmul.f32 0.00390625, %v547_v54 }
 0x1a2   : > { %v2554_v56 = vpop.eup %2553  ;;  %v2349_v20 = vpack.c.bf16 %v655_v52, %v654_v47  ;;  %v614_v57 = vmul.f32 %v2552_v55, %v3476_v28  ;;  %v615_v62 = vmul.f32 %v2552_v55, %v3479_v29  ;;  %v583_v0 = vadd.f32 1e-06, %v567_v53 }
 0x1a3   : > { %v2348_v1 = vpack.c.bf16 %v653_v18, %v652_v14  ;;  %v612_v63 = vmul.f32 %v2554_v56, %v3482_v30  ;;  %v613_v2 = vmul.f32 %v2554_v56, %v3485_v31  ;;  %v582_v5 = vadd.f32 1e-06, %v566_v19 }
 0x1a4   : > { %777 = vst [vmem:[#allocation2 + $0x68] sm:$0xff] %v2349_v20  ;;  %v658_v3 = vmul.f32 %v3578_v27, %v614_v57  ;;  %v659_v4 = vmul.f32 %v3580_v32, %v615_v62  ;;  %2567 = vrsqrt.f32 %v583_v0 }
 0x1a5   : > { %v2556_v6 = vpop.eup %2555  ;;  %776 = vst [vmem:[#allocation2 + $0x50] sm:$0xff] %v2348_v1  ;;  %v656_v9 = vmul.f32 %v3578_v27, %v612_v63  ;;  %v657_v28 = vmul.f32 %v3580_v32, %v613_v2  ;;  %2569 = vrsqrt.f32 %v582_v5 }
 0x1a6   : > { %v2558_v29 = vpop.eup %2557  ;;  %v2351_v17 = vpack.c.bf16 %v659_v4, %v658_v3  ;;  %v618_v30 = vmul.f32 %v2556_v6, %v3496_v38  ;;  %v619_v31 = vmul.f32 %v2556_v6, %v3499_v39 }
 0x1a7   : > { %v2350_v21 = vpack.c.bf16 %v657_v28, %v656_v9  ;;  %v616_v22 = vmul.f32 %v2558_v29, %v3502_v40  ;;  %v617_v23 = vmul.f32 %v2558_v29, %v3505_v41 }
 0x1a8   : > { %779 = vst [vmem:[#allocation2 + $0x48] sm:$0xff] %v2351_v17  ;;  %v662_v24 = vmul.f32 %v3578_v27, %v618_v30  ;;  %v663_v25 = vmul.f32 %v3580_v32, %v619_v31 }
 0x1a9   : > { %v2560_v26 = vpop.eup %2559  ;;  %778 = vst [vmem:[#allocation2 + $0x8] sm:$0xff] %v2350_v21  ;;  %v660_v33 = vmul.f32 %v3578_v27, %v616_v22  ;;  %v661_v7 = vmul.f32 %v3580_v32, %v617_v23 }
 0x1aa   : > { %v2562_v8 = vpop.eup %2561  ;;  %v2353_v38 = vpack.c.bf16 %v663_v25, %v662_v24  ;;  %v622_v39 = vmul.f32 %v2560_v26, %v3516_v48  ;;  %v623_v12 = vmul.f32 %v2560_v26, %v3519_v49 }
 0x1ab   : > { %v2352_v40 = vpack.c.bf16 %v661_v7, %v660_v33  ;;  %v620_v41 = vmul.f32 %v2562_v8, %v3522_v50  ;;  %v621_v34 = vmul.f32 %v2562_v8, %v3525_v51 }
 0x1ac   : > { %781 = vst [vmem:[#allocation2 + $0x20] sm:$0xff] %v2353_v38  ;;  %v666_v13 = vmul.f32 %v3578_v27, %v622_v39  ;;  %v667_v35 = vmul.f32 %v3580_v32, %v623_v12 }
 0x1ad   : > { %v2564_v36 = vpop.eup %2563  ;;  %780 = vst [vmem:[#allocation2 + $0x40] sm:$0xff] %v2352_v40  ;;  %v664_v37 = vmul.f32 %v3578_v27, %v620_v41  ;;  %v665_v42 = vmul.f32 %v3580_v32, %v621_v34 }
 0x1ae   : > { %v2566_v43 = vpop.eup %2565  ;;  %v2355_v48 = vpack.c.bf16 %v667_v35, %v666_v13  ;;  %v626_v49 = vmul.f32 %v2564_v36, %v3536_v58  ;;  %v627_v44 = vmul.f32 %v2564_v36, %v3539_v59 }
 0x1af   : > { %v2354_v50 = vpack.c.bf16 %v665_v42, %v664_v37  ;;  %v624_v51 = vmul.f32 %v2566_v43, %v3542_v60  ;;  %v625_v45 = vmul.f32 %v2566_v43, %v3545_v61 }
 0x1b0   : > { %783 = vst [vmem:[#allocation2 + $0x38] sm:$0xff] %v2355_v48  ;;  %v670_v46 = vmul.f32 %v3578_v27, %v626_v49  ;;  %v671_v47 = vmul.f32 %v3580_v32, %v627_v44 }
 0x1b1   : > { %v2568_v52 = vpop.eup %2567  ;;  %782 = vst [vmem:[#allocation2 + $0x10] sm:$0xff] %v2354_v50  ;;  %v668_v53 = vmul.f32 %v3578_v27, %v624_v51  ;;  %v669_v54 = vmul.f32 %v3580_v32, %v625_v45 }
 0x1b2   : > { %v2570_v55 = vpop.eup %2569  ;;  %v2357_v58 = vpack.c.bf16 %v671_v47, %v670_v46  ;;  %v630_v59 = vmul.f32 %v2568_v52, %v3556_v10  ;;  %v631_v14 = vmul.f32 %v2568_v52, %v3559_v11 }
 0x1b3   : > { %v2356_v60 = vpack.c.bf16 %v669_v54, %v668_v53  ;;  %v628_v61 = vmul.f32 %v2570_v55, %v3562_v15  ;;  %v629_v18 = vmul.f32 %v2570_v55, %v3565_v16 }
 0x1b4   : > { %785 = vst [vmem:[#allocation2 + $0x70] sm:$0xff] %v2357_v58  ;;  %v674_v19 = vmul.f32 %v3578_v27, %v630_v59  ;;  %v675_v56 = vmul.f32 %v3580_v32, %v631_v14 }
 0x1b5   : > { %784 = vst [vmem:[#allocation2 + $0x60] sm:$0xff] %v2356_v60  ;;  %v672_v20 = vmul.f32 %v3578_v27, %v628_v61  ;;  %v673_v57 = vmul.f32 %v3580_v32, %v629_v18 }
 0x1b6   : > { %v2359_v62 = vpack.c.bf16 %v675_v56, %v674_v19 }
 0x1b7   : > { %v2358_v0 = vpack.c.bf16 %v673_v57, %v672_v20 }
 0x1b8   : > { %787 = vst [vmem:[#allocation2 + $0x28] sm:$0xff] %v2359_v62 }
 0x1b9   : > { %786 = vst [vmem:[#allocation2 + $0x78] sm:$0xff] %v2358_v0 }
 0x1ba PF: > { %s4061_s18 = sld [smem:[#allocation34_spill]] }
 0x1bb   : > { %s4062_s10 = sld [smem:[#allocation33_spill]] }
 0x1c0   : > { %s2252_s28 = sshll.u32 %s4061_s18, 2 }
 0x1c1   : > { %s821_s8 = sadd.s32 %s4062_s10, %s2252_s28 }
 0x1c2   : > { %s822_s14 = sld [smem:[#allocation5 + %s821_s8]] }
 0x1c8   : > { %p2253_p12 = scmp.eq.s32.totalorder %s822_s14, 0 }
 0x1ca   : > { %826 = sbr.rel (%p2253_p12) target bundleno = 992 (0x3e0), region = 60 }
 0x1cf   : > { %v2571_v10 = vld [vmem:[%s3391_s19 + $0x74] ss:$8 sps:$4 sm:$0xff]   ;;  %v2573_v11 = vld [vmem:[%s3391_s19 + $0x70] ss:$8 sps:$4 sm:$0xff]   ;;  %v2574_v15 = vld [vmem:[%s3391_s19 + $0x64] ss:$8 sps:$4 sm:$0xff]  }
 0x1d0   : > { %1115 = vmatprep.subr.bf16.mxu0 %v2571_v10  ;;  %v2576_v16 = vld [vmem:[%s3391_s19 + $0x60] ss:$8 sps:$4 sm:$0xff]   ;;  %v2577_v27 = vld [vmem:[%s3391_s19 + $0x54] ss:$8 sps:$4 sm:$0xff]   ;;  %v2579_v32 = vld [vmem:[%s3391_s19 + $0x50] ss:$8 sps:$4 sm:$0xff]  }
 0x1d1   : > { %1116 = vmatpush1.bf16.msra.mxu0 %v2573_v11  ;;  %v2580_v1 = vld [vmem:[%s3391_s19 + $0x44] ss:$8 sps:$4 sm:$0xff]   ;;  %v2582_v63 = vld [vmem:[%s3391_s19 + $0x40] ss:$8 sps:$4 sm:$0xff]   ;;  %v2583_v2 = vld [vmem:[%s3391_s19 + $0x34] ss:$8 sps:$4 sm:$0xff]  }
 0x1d2   : > { %1117 = vmatprep.subr.bf16.mxu0 %v2574_v15  ;;  %v2585_v5 = vld [vmem:[%s3391_s19 + $0x30] ss:$8 sps:$4 sm:$0xff]   ;;  %v2586_v3 = vld [vmem:[%s3391_s19 + $0x24] ss:$8 sps:$4 sm:$0xff]   ;;  %v2588_v4 = vld [vmem:[%s3391_s19 + $0x20] ss:$8 sps:$4 sm:$0xff]  }
 0x1d3   : > { %v2589_v6 = vld [vmem:[%s3391_s19 + $0x14] ss:$8 sps:$4 sm:$0xff]   ;;  %v2591_v28 = vld [vmem:[%s3391_s19 + $0x10] ss:$8 sps:$4 sm:$0xff]   ;;  %v2592_v29 = vld [vmem:[%s3391_s19 + $0x4] ss:$8 sps:$4 sm:$0xff]  }
 0x1d4   : > { %v2621_v9 = vld [vmem:[#allocation2 + $0x34] ss:$-48 sps:$4 sm:$0xff]   ;;  %v2594_v17 = vld [vmem:[%s3391_s19] ss:$8 sps:$4 sm:$0xff]   ;;  %v2597_v31 = vld [vmem:[%s3391_s19 + $0xf0] ss:$8 sps:$4 sm:$0xff]  }
 0x1d5   : > { %1118 = vmatpush1.bf16.msra.mxu0 %v2576_v16  ;;  %1147 = vmatprep.mubr.bf16.mxu0 %v2621_v9  ;;  %v2595_v30 = vld [vmem:[%s3391_s19 + $0xf4] ss:$8 sps:$4 sm:$0xff]   ;;  %v2636_v22 = vld [vmem:[%s3398_s1 + $0x70] ss:$8 sps:$4 sm:$0xff]   ;;  %v2598_v23 = vld [vmem:[%s3391_s19 + $0xe4] ss:$8 sps:$4 sm:$0xff]  }
 0x1d6   : > { %1119 = vmatprep.subr.bf16.mxu0 %v2577_v27  ;;  %v2634_v21 = vld [vmem:[%s3398_s1 + $0x74] ss:$8 sps:$4 sm:$0xff]   ;;  %v2637_v24 = vld [vmem:[%s3398_s1 + $0x64] ss:$8 sps:$4 sm:$0xff]   ;;  %v2639_v25 = vld [vmem:[%s3398_s1 + $0x60] ss:$8 sps:$4 sm:$0xff]  }
 0x1d7   : > { %1468 = vmatprep.subr.bf16.mxu1 %v2634_v21  ;;  %v2640_v26 = vld [vmem:[%s3398_s1 + $0x54] ss:$8 sps:$4 sm:$0xff]   ;;  %v2600_v33 = vld [vmem:[%s3391_s19 + $0xe0] ss:$8 sps:$4 sm:$0xff]   ;;  %v2642_v8 = vld [vmem:[%s3398_s1 + $0x50] ss:$8 sps:$4 sm:$0xff]  }
 0x1d8   : > { %1469 = vmatpush1.bf16.msra.mxu1 %v2636_v22  ;;  %v2601_v7 = vld [vmem:[%s3391_s19 + $0xd4] ss:$8 sps:$4 sm:$0xff]   ;;  %v2643_v38 = vld [vmem:[%s3398_s1 + $0x44] ss:$8 sps:$4 sm:$0xff]   ;;  %v2603_v39 = vld [vmem:[%s3391_s19 + $0xd0] ss:$8 sps:$4 sm:$0xff]  }
 0x1d9   : > { %1120 = vmatpush1.bf16.msra.mxu0 %v2579_v32  ;;  %1470 = vmatprep.subr.bf16.mxu1 %v2637_v24  ;;  %v2604_v12 = vld [vmem:[%s3391_s19 + $0xc4] ss:$8 sps:$4 sm:$0xff]   ;;  %v2645_v40 = vld [vmem:[%s3398_s1 + $0x40] ss:$8 sps:$4 sm:$0xff]   ;;  %v2646_v41 = vld [vmem:[%s3398_s1 + $0x34] ss:$8 sps:$4 sm:$0xff]   ;;  %v1597_v24 = vlaneseq }
 0x1da   : > { %1121 = vmatprep.subr.bf16.mxu0 %v2580_v1  ;;  %v2606_v34 = vld [vmem:[%s3391_s19 + $0xc0] ss:$8 sps:$4 sm:$0xff]   ;;  %v2607_v13 = vld [vmem:[%s3391_s19 + $0xb4] ss:$8 sps:$4 sm:$0xff]   ;;  %v2609_v35 = vld [vmem:[%s3391_s19 + $0xb0] ss:$8 sps:$4 sm:$0xff]  }
 0x1db   : > { %v2648_v36 = vld [vmem:[%s3398_s1 + $0x30] ss:$8 sps:$4 sm:$0xff]   ;;  %v2649_v37 = vld [vmem:[%s3398_s1 + $0x24] ss:$8 sps:$4 sm:$0xff]   ;;  %v2651_v43 = vld [vmem:[%s3398_s1 + $0x20] ss:$8 sps:$4 sm:$0xff]  }
 0x1dc   : > { %1471 = vmatpush1.bf16.msra.mxu1 %v2639_v25  ;;  %v2610_v42 = vld [vmem:[%s3391_s19 + $0xa4] ss:$8 sps:$4 sm:$0xff]   ;;  %v2652_v48 = vld [vmem:[%s3398_s1 + $0x14] ss:$8 sps:$4 sm:$0xff]   ;;  %v2612_v49 = vld [vmem:[%s3391_s19 + $0xa0] ss:$8 sps:$4 sm:$0xff]  }
 0x1dd   : > { %1122 = vmatpush1.bf16.msra.mxu0 %v2582_v63  ;;  %1472 = vmatprep.subr.bf16.mxu1 %v2640_v26  ;;  %v2613_v44 = vld [vmem:[%s3391_s19 + $0x94] ss:$8 sps:$4 sm:$0xff]   ;;  %v2654_v50 = vld [vmem:[%s3398_s1 + $0x10] ss:$8 sps:$4 sm:$0xff]   ;;  %v2655_v51 = vld [vmem:[%s3398_s1 + $0x4] ss:$8 sps:$4 sm:$0xff]  }
 0x1de   : > { %1123 = vmatprep.subr.bf16.mxu0 %v2583_v2  ;;  %v2615_v45 = vld [vmem:[%s3391_s19 + $0x90] ss:$8 sps:$4 sm:$0xff]   ;;  %v2616_v46 = vld [vmem:[%s3391_s19 + $0x84] ss:$8 sps:$4 sm:$0xff]   ;;  %v2657_v47 = vld [vmem:[%s3398_s1] ss:$8 sps:$4 sm:$0xff]  }
 0x1df   : > { %v2658_v52 = vld [vmem:[%s3398_s1 + $0xf4] ss:$8 sps:$4 sm:$0xff]   ;;  %v2618_v53 = vld [vmem:[%s3391_s19 + $0x80] ss:$8 sps:$4 sm:$0xff]   ;;  %v2660_v58 = vld [vmem:[%s3398_s1 + $0xf0] ss:$8 sps:$4 sm:$0xff]  }
 0x1e0   : > { %1473 = vmatpush1.bf16.msra.mxu1 %v2642_v8  ;;  %v829_v54 = vld [vmem:[#allocation2 + $0x58] sm:$0xff]  ;;  %v2619_v59 = vld [vmem:[#allocation2 + $0x30] ss:$-48 sps:$4 sm:$0xff]   ;;  %v2661_v14 = vld [vmem:[%s3398_s1 + $0xe4] ss:$8 sps:$4 sm:$0xff]   ;;  %s4063_s19 = sld [smem:[#allocation33_spill]] }
 0x1e1   : > { %1124 = vmatpush1.bf16.msra.mxu0 %v2585_v5  ;;  %1474 = vmatprep.subr.bf16.mxu1 %v2643_v38  ;;  %v830_v55 = vld [vmem:[#allocation2 + $0x18] sm:$0xff]  ;;  %v2663_v61 = vld [vmem:[%s3398_s1 + $0xe0] ss:$8 sps:$4 sm:$0xff]   ;;  %v2667_v20 = vld [vmem:[%s3398_s1 + $0xc4] ss:$8 sps:$4 sm:$0xff]   ;;  %v1598_v25 = vand.u32 127, %v1597_v24 }
 0x1e2   : > { %1125 = vmatprep.subr.bf16.mxu0 %v2586_v3  ;;  %v2257_v60 = vcombine.high %v829_v54, %v830_v55  ;;  %v2664_v18 = vld [vmem:[%s3398_s1 + $0xd4] ss:$8 sps:$4 sm:$0xff]   ;;  %v2666_v19 = vld [vmem:[%s3398_s1 + $0xd0] ss:$8 sps:$4 sm:$0xff]   ;;  %v2256_v56 = vcombine.low %v829_v54, %v830_v55  ;;  %v2669_v62 = vld [vmem:[%s3398_s1 + $0xc0] ss:$8 sps:$4 sm:$0xff]  }
 0x1e3   : > { %v2622_v57 = vld [vmem:[#allocation2 + $0x54] ss:$24 sps:$4 sm:$0xff]   ;;  %v2672_v15 = vld [vmem:[%s3398_s1 + $0xb0] ss:$8 sps:$4 sm:$0xff]   ;;  %v835_v32 = vld [vmem:[#allocation2 + $0x40] sm:$0xff]  ;;  %vm1617_vm1 = vcmask 31744  }
 0x1e4   : > { %1475 = vmatpush1.bf16.msra.mxu1 %v2645_v40  ;;  %v2670_v0 = vld [vmem:[%s3398_s1 + $0xb4] ss:$8 sps:$4 sm:$0xff]   ;;  %v833_v10 = vld [vmem:[#allocation2 + $0x8] sm:$0xff]  ;;  %v836_v1 = vld [vmem:[#allocation2 + $0x20] sm:$0xff] }
 0x1e5   : > { %1126 = vmatpush1.bf16.msra.mxu0 %v2588_v4  ;;  %1476 = vmatprep.subr.bf16.mxu1 %v2646_v41  ;;  %v834_v11 = vld [vmem:[#allocation2 + $0x48] sm:$0xff]  ;;  %v2263_v2 = vcombine.high %v835_v32, %v836_v1  ;;  %v2262_v5 = vcombine.low %v835_v32, %v836_v1  ;;  %v2625_v3 = vld [vmem:[#allocation2 + $0x14] ss:$40 sps:$4 sm:$0xff]   ;;  %v2627_v4 = vld [vmem:[#allocation2 + $0x10] ss:$40 sps:$4 sm:$0xff]  }
 0x1e6   : > { %1127 = vmatprep.subr.bf16.mxu0 %v2589_v6  ;;  %v2624_v16 = vld [vmem:[#allocation2 + $0x50] ss:$24 sps:$4 sm:$0xff]   ;;  %v2261_v27 = vcombine.high %v833_v10, %v834_v11  ;;  %v2260_v63 = vcombine.low %v833_v10, %v834_v11  ;;  %v2628_v6 = vld [vmem:[#allocation2 + $0x64] ss:$16 sps:$4 sm:$0xff]   ;;  %v1599_v26 = vstv %s4063_s19  ;;  %v1584_v40 = vld [vmem:[%s3411_s5 + $0x18] sm:$0xff] }
 0x1e7   : > { %v2630_v9 = vld [vmem:[#allocation2 + $0x60] ss:$16 sps:$4 sm:$0xff]   ;;  %v2679_v22 = vld [vmem:[%s3398_s1 + $0x84] ss:$8 sps:$4 sm:$0xff]   ;;  %vm3714_vm0 = vcmp.eq.s32.totalorder %v1598_v25, %v1599_v26  ;;  %v1596_v32 = vld [vmem:[%s3411_s5 + $0x78] sm:$0xff] }
 0x1e8   : > { %1477 = vmatpush1.bf16.msra.mxu1 %v2648_v36  ;;  %v2678_v21 = vld [vmem:[%s3398_s1 + $0x90] ss:$8 sps:$4 sm:$0xff]   ;;  %v1590_v55 = vld [vmem:[%s3411_s5 + $0x48] sm:$0xff] }
 0x1e9   : > { %1128 = vmatpush1.bf16.msra.mxu0 %v2591_v28  ;;  %1478 = vmatprep.subr.bf16.mxu1 %v2649_v37  ;;  %v2631_v28 = vld [vmem:[#allocation2 + $0x7c] ss:$-80 sps:$4 sm:$0xff]   ;;  %v1595_v10 = vld [vmem:[%s3411_s5 + $0x70] sm:$0xff] }
 0x1ea   : > { %1129 = vmatprep.subr.bf16.mxu0 %v2592_v29  ;;  %v2633_v29 = vld [vmem:[#allocation2 + $0x78] ss:$-80 sps:$4 sm:$0xff]  }
 0x1ec   : > { %1479 = vmatpush1.bf16.msra.mxu1 %v2651_v43  ;;  %v1586_v43 = vld [vmem:[%s3411_s5 + $0x28] sm:$0xff] }
 0x1ed   : > { %1130 = vmatpush1.bf16.msra.mxu0 %v2594_v17  ;;  %1480 = vmatprep.subr.bf16.mxu1 %v2652_v48  ;;  %v2673_v17 = vld [vmem:[%s3398_s1 + $0xa4] ss:$8 sps:$4 sm:$0xff]   ;;  %v1587_v48 = vld [vmem:[%s3411_s5 + $0x30] sm:$0xff] }
 0x1ee   : > { %1131 = vmatprep.subr.bf16.mxu0 %v2595_v30  ;;  %v2675_v30 = vld [vmem:[%s3398_s1 + $0xa0] ss:$8 sps:$4 sm:$0xff]  }
 0x1f0   : > { %1481 = vmatpush1.bf16.msra.mxu1 %v2654_v50  ;;  %v1606_v50 = vsel %vm3714_vm0, %v1586_v43, 0.0 }
 0x1f1   : > { %1132 = vmatpush2.bf16.msra.mxu0 %v2597_v31  ;;  %1482 = vmatprep.subr.bf16.mxu1 %v2655_v51  ;;  %v2676_v31 = vld [vmem:[%s3398_s1 + $0x94] ss:$8 sps:$4 sm:$0xff]   ;;  %v1607_v51 = vsel %vm3714_vm0, %v1587_v48, 0.0 }
 0x1f2   : > { %1133 = vmatprep.subr.bf16.mxu0 %v2598_v23  ;;  %v2681_v23 = vld [vmem:[%s3398_s1 + $0x80] ss:$8 sps:$4 sm:$0xff]  }
 0x1f4   : > { %1483 = vmatpush1.bf16.msra.mxu1 %v2657_v47  ;;  %v1633_v47 = vsel %vm1617_vm1, %v1606_v50, 0.0 }
 0x1f5   : > { %1134 = vmatpush2.bf16.msra.mxu0 %v2600_v33  ;;  %1484 = vmatprep.subr.bf16.mxu1 %v2658_v52  ;;  %v1581_v33 = vld [vmem:[%s3411_s5] sm:$0xff]  ;;  %v1636_v52 = vsel %vm1617_vm1, %v1607_v51, 0.0 }
 0x1f6   : > { %1135 = vmatprep.subr.bf16.mxu0 %v2601_v7  ;;  %v1601_v8 = vsel %vm3714_vm0, %v1581_v33, 0.0 }
 0x1f7   : > { %v1618_v38 = vsel %vm1617_vm1, %v1601_v8, 0.0 }
 0x1f8   : > { %1485 = vmatpush2.bf16.msra.mxu1 %v2660_v58  ;;  %1619 = vadd.xlane.f32.xlu0 %v1618_v38  ;;  %v1591_v58 = vld [vmem:[%s3411_s5 + $0x50] sm:$0xff] }
 0x1f9   : > { %1136 = vmatpush2.bf16.msra.mxu0 %v2603_v39  ;;  %1486 = vmatprep.subr.bf16.mxu1 %v2661_v14  ;;  %v1582_v39 = vld [vmem:[%s3411_s5 + $0x8] sm:$0xff] }
 0x1fa   : > { %1137 = vmatprep.subr.bf16.mxu0 %v2604_v12  ;;  %v1583_v12 = vld [vmem:[%s3411_s5 + $0x10] sm:$0xff]  ;;  %v1602_v41 = vsel %vm3714_vm0, %v1582_v39, 0.0 }
 0x1fb   : > { %v1621_v36 = vsel %vm1617_vm1, %v1602_v41, 0.0 }
 0x1fc   : > { %1487 = vmatpush2.bf16.msra.mxu1 %v2663_v61  ;;  %1622 = vadd.xlane.f32.xlu0 %v1621_v36  ;;  %v1611_v61 = vsel %vm3714_vm0, %v1591_v58, 0.0 }
 0x1fd   : > { %1138 = vmatpush2.bf16.msra.mxu0 %v2606_v34  ;;  %1488 = vmatprep.subr.bf16.mxu1 %v2664_v18  ;;  %v1603_v34 = vsel %vm3714_vm0, %v1583_v12, 0.0  ;;  %v1592_v18 = vld [vmem:[%s3411_s5 + $0x58] sm:$0xff] }
 0x1fe   : > { %1139 = vmatprep.subr.bf16.mxu0 %v2607_v13  ;;  %v1604_v13 = vsel %vm3714_vm0, %v1584_v40, 0.0  ;;  %v1624_v37 = vsel %vm1617_vm1, %v1603_v34, 0.0 }
 0x1ff   : > { %1625 = vadd.xlane.f32.xlu1 %v1624_v37 }
 0x200   : > { %1489 = vmatpush2.bf16.msra.mxu1 %v2666_v19  ;;  %v1593_v19 = vld [vmem:[%s3411_s5 + $0x60] sm:$0xff] }
 0x201   : > { %1140 = vmatpush2.bf16.msra.mxu0 %v2609_v35  ;;  %1490 = vmatprep.subr.bf16.mxu1 %v2667_v20  ;;  %v1585_v35 = vld [vmem:[%s3411_s5 + $0x20] sm:$0xff]  ;;  %v1648_v20 = vsel %vm1617_vm1, %v1611_v61, 0.0 }
 0x202   : > { %1141 = vmatprep.subr.bf16.mxu0 %v2610_v42  ;;  %v1605_v42 = vsel %vm3714_vm0, %v1585_v35, 0.0 }
 0x204   : > { %1491 = vmatpush2.bf16.msra.mxu1 %v2669_v62  ;;  %v1613_v62 = vsel %vm3714_vm0, %v1593_v19, 0.0 }
 0x205   : > { %1142 = vmatpush2.bf16.msra.mxu0 %v2612_v49  ;;  %1492 = vmatprep.subr.bf16.mxu1 %v2670_v0  ;;  %v1627_v49 = vsel %vm1617_vm1, %v1604_v13, 0.0  ;;  %v1594_v0 = vld [vmem:[%s3411_s5 + $0x68] sm:$0xff] }
 0x206   : > { %1143 = vmatprep.subr.bf16.mxu0 %v2613_v44  ;;  %v1630_v44 = vsel %vm1617_vm1, %v1605_v42, 0.0  ;;  %1628 = vadd.xlane.f32.xlu1 %v1627_v49 }
 0x207   : > { %1631 = vadd.xlane.f32.xlu0 %v1630_v44 }
 0x208   : > { %1493 = vmatpush2.bf16.msra.mxu1 %v2672_v15  ;;  %v1654_v15 = vsel %vm1617_vm1, %v1613_v62, 0.0 }
 0x209   : > { %1144 = vmatpush2.bf16.msra.mxu0 %v2615_v45  ;;  %1494 = vmatprep.subr.bf16.mxu1 %v2673_v17  ;;  %v1588_v45 = vld [vmem:[%s3411_s5 + $0x38] sm:$0xff] }
 0x20a   : > { %1145 = vmatprep.subr.bf16.mxu0 %v2616_v46  ;;  %v1589_v46 = vld [vmem:[%s3411_s5 + $0x40] sm:$0xff]  ;;  %1634 = vadd.xlane.f32.xlu1 %v1633_v47 }
 0x20b   : > { %v1609_v54 = vsel %vm3714_vm0, %v1589_v46, 0.0  ;;  %1637 = vadd.xlane.f32.xlu0 %v1636_v52 }
 0x20c   : > { %1495 = vmatpush2.bf16.msra.mxu1 %v2675_v30  ;;  %v1642_v14 = vsel %vm1617_vm1, %v1609_v54, 0.0 }
 0x20d   : > { %1146 = vmatpush2.bf16.msra.mxu0 %v2618_v53  ;;  %1496 = vmatprep.subr.bf16.mxu1 %v2676_v31  ;;  %v1608_v53 = vsel %vm3714_vm0, %v1588_v45, 0.0 }
 0x20f   : > { %1643 = vadd.xlane.f32.xlu0 %v1642_v14 }
 0x210   : > { %1148 = vmatmul.mubr.bf16.vlgmr.msra.gmra.mxu0 %v2619_v59  ;;  %1497 = vmatpush2.bf16.msra.mxu1 %v2678_v21  ;;  %v1639_v59 = vsel %vm1617_vm1, %v1608_v53, 0.0 }
 0x211   : > { %1157 = vmatprep.mubr.bf16.mxu0 %v2257_v60  ;;  %1498 = vmatprep.subr.bf16.mxu1 %v2679_v22  ;;  %v1610_v60 = vsel %vm3714_vm0, %v1590_v55, 0.0 }
 0x212   : > { %1640 = vadd.xlane.f32.xlu1 %v1639_v59 }
 0x213   : > { %1649 = vadd.xlane.f32.xlu0 %v1648_v20 }
 0x214   : > { %1499 = vmatpush2.bf16.msra.mxu1 %v2681_v23 }
 0x217   : > { %1655 = vadd.xlane.f32.xlu0 %v1654_v15 }
 0x218   : > { %1158 = vmatmul.mubr.bf16.gmra.mxu0 %v2256_v56  ;;  %v1645_v56 = vsel %vm1617_vm1, %v1610_v60, 0.0 }
 0x219   : > { %1167 = vmatprep.mubr.bf16.mxu0 %v2622_v57  ;;  %v1612_v57 = vsel %vm3714_vm0, %v1592_v18, 0.0  ;;  %1646 = vadd.xlane.f32.xlu1 %v1645_v56 }
 0x21a   : > { %v1651_v11 = vsel %vm1617_vm1, %v1612_v57, 0.0 }
 0x21d   : > { %1652 = vadd.xlane.f32.xlu1 %v1651_v11 }
 0x220   : > { %1168 = vmatmul.mubr.bf16.gmra.mxu0 %v2624_v16  ;;  %v1614_v16 = vsel %vm3714_vm0, %v1594_v0, 0.0 }
 0x221   : > { %1177 = vmatprep.mubr.bf16.mxu0 %v2261_v27  ;;  %v1615_v27 = vsel %vm3714_vm0, %v1595_v10, 0.0  ;;  %v1657_v1 = vsel %vm1617_vm1, %v1614_v16, 0.0 }
 0x222   : > { %1658 = vadd.xlane.f32.xlu1 %v1657_v1 }
 0x228   : > { %1178 = vmatmul.mubr.bf16.gmra.mxu0 %v2260_v63  ;;  %v1660_v63 = vsel %vm1617_vm1, %v1615_v27, 0.0 }
 0x229   : > { %1187 = vmatprep.mubr.bf16.mxu0 %v2263_v2  ;;  %v1616_v2 = vsel %vm3714_vm0, %v1596_v32, 0.0  ;;  %1661 = vadd.xlane.f32.xlu0 %v1660_v63 }
 0x230   : > { %1188 = vmatmul.mubr.bf16.gmra.mxu0 %v2262_v5  ;;  %v1663_v5 = vsel %vm1617_vm1, %v1616_v2, 0.0 }
 0x231   : > { %1197 = vmatprep.mubr.bf16.mxu0 %v2625_v3  ;;  %1664 = vadd.xlane.f32.xlu1 %v1663_v5 }
 0x238   : > { %1198 = vmatmul.mubr.bf16.gmra.mxu0 %v2627_v4 }
 0x239   : > { %1207 = vmatprep.mubr.bf16.mxu0 %v2628_v6 }
 0x240   : > { %1208 = vmatmul.mubr.bf16.gmra.mxu0 %v2630_v9 }
 0x241   : > { %1217 = vmatprep.mubr.bf16.mxu0 %v2631_v28 }
 0x248   : > { %1218 = vmatmul.mubr.bf16.gmra.mxu0 %v2633_v29 }
 0x2d0   : > { %v1149_v3 = vpop.f32.mrf.mxu0 }
 0x2d1   : > { %v1228_v30 = vmax.f32 %v1149_v3, 0.0 }
 0x2d2   : > { %v1151_v4 = vpop.f32.mrf.mxu0 }
 0x2d3   : > { %v1229_v29 = vmax.f32 %v1151_v4, 0.0 }
 0x2d4   : > { %v1153_v6 = vpop.f32.mrf.mxu0 }
 0x2d5   : > { %v1230_v9 = vmax.f32 %v1153_v6, 0.0 }
 0x2d6   : > { %v1155_v28 = vpop.f32.mrf.mxu0 }
 0x2d7   : > { %v1231_v17 = vmax.f32 %v1155_v28, 0.0  ;;  %v1260_v22 = vpack.c.bf16 %v1230_v9, %v1228_v30 }
 0x2d8   : > { %v1159_v31 = vpop.f32.mrf.mxu0 }
 0x2d9   : > { %v1261_v21 = vpack.c.bf16 %v1231_v17, %v1229_v29  ;;  %v1232_v8 = vmax.f32 %v1159_v31, 0.0 }
 0x2da   : > { %v1161_v23 = vpop.f32.mrf.mxu0 }
 0x2db   : > { %1500 = vmatprep.mubr.bf16.mxu1 %v1261_v21  ;;  %v1233_v33 = vmax.f32 %v1161_v23, 0.0 }
 0x2dc   : > { %v1163_v24 = vpop.f32.mrf.mxu0  ;;  %1501 = vmatmul.mubr.bf16.vlgmr.msra.gmra.mxu1 %v1260_v22 }
 0x2dd   : > { %v1234_v25 = vmax.f32 %v1163_v24, 0.0 }
 0x2de   : > { %v1165_v26 = vpop.f32.mrf.mxu0 }
 0x2df   : > { %v1235_v7 = vmax.f32 %v1165_v26, 0.0  ;;  %v1262_v12 = vpack.c.bf16 %v1234_v25, %v1232_v8 }
 0x2e0   : > { %v1169_v38 = vpop.f32.mrf.mxu0 }
 0x2e1   : > { %v1263_v39 = vpack.c.bf16 %v1235_v7, %v1233_v33  ;;  %v1236_v37 = vmax.f32 %v1169_v38, 0.0  ;;  %v1620_v7 = vpop.xlane.xlu0 %1619  ;;  %v1666_v38 = vld [vmem:[#allocation3 + $0xa8] sm:$0xff] }
 0x2e2   : > { %v1171_v40 = vpop.f32.mrf.mxu0 }
 0x2e3   : > { %1510 = vmatprep.mubr.bf16.mxu1 %v1263_v39  ;;  %v1237_v35 = vmax.f32 %v1171_v40, 0.0  ;;  %v1667_v40 = vld [vmem:[#allocation3 + $0x68] sm:$0xff] }
 0x2e4   : > { %v1173_v41 = vpop.f32.mrf.mxu0  ;;  %1511 = vmatmul.mubr.bf16.gmra.mxu1 %v1262_v12 }
 0x2e5   : > { %v1238_v34 = vmax.f32 %v1173_v41, 0.0  ;;  %v1623_v41 = vpop.xlane.xlu0 %1622 }
 0x2e6   : > { %v1175_v13 = vpop.f32.mrf.mxu0 }
 0x2e7   : > { %v1239_v36 = vmax.f32 %v1175_v13, 0.0  ;;  %v1264_v48 = vpack.c.bf16 %v1238_v34, %v1236_v37  ;;  %v1626_v37 = vpop.xlane.xlu1 %1625 }
 0x2e8   : > { %v1179_v42 = vpop.f32.mrf.mxu0 }
 0x2e9   : > { %v1265_v43 = vpack.c.bf16 %v1239_v36, %v1237_v35  ;;  %v1240_v47 = vmax.f32 %v1179_v42, 0.0  ;;  %v1668_v36 = vld [vmem:[#allocation3 + $0x10] sm:$0xff] }
 0x2ea   : > { %v1181_v49 = vpop.f32.mrf.mxu0 }
 0x2eb   : > { %1520 = vmatprep.mubr.bf16.mxu1 %v1265_v43  ;;  %v1241_v45 = vmax.f32 %v1181_v49, 0.0  ;;  %v1669_v49 = vld [vmem:[#allocation3 + $0xc0] sm:$0xff] }
 0x2ec   : > { %v1183_v44 = vpop.f32.mrf.mxu0  ;;  %1521 = vmatmul.mubr.bf16.gmra.mxu1 %v1264_v48 }
 0x2ed   : > { %v1242_v50 = vmax.f32 %v1183_v44, 0.0 }
 0x2ee   : > { %v1185_v51 = vpop.f32.mrf.mxu0 }
 0x2ef   : > { %v1243_v46 = vmax.f32 %v1185_v51, 0.0  ;;  %v1266_v54 = vpack.c.bf16 %v1242_v50, %v1240_v47 }
 0x2f0   : > { %v1189_v52 = vpop.f32.mrf.mxu0 }
 0x2f1   : > { %v1267_v53 = vpack.c.bf16 %v1243_v46, %v1241_v45  ;;  %v1244_v18 = vmax.f32 %v1189_v52, 0.0  ;;  %v1670_v45 = vld [vmem:[#allocation3 + $0xc8] sm:$0xff] }
 0x2f2   : > { %v1191_v55 = vpop.f32.mrf.mxu0 }
 0x2f3   : > { %1530 = vmatprep.mubr.bf16.mxu1 %v1267_v53  ;;  %v1245_v60 = vmax.f32 %v1191_v55, 0.0  ;;  %v1671_v53 = vld [vmem:[#allocation3 + $0xb0] sm:$0xff] }
 0x2f4   : > { %v1193_v58 = vpop.f32.mrf.mxu0  ;;  %1531 = vmatmul.mubr.bf16.gmra.mxu1 %v1266_v54  ;;  %v1629_v54 = vpop.xlane.xlu1 %1628 }
 0x2f5   : > { %v1246_v59 = vmax.f32 %v1193_v58, 0.0 }
 0x2f6   : > { %v1195_v14 = vpop.f32.mrf.mxu0 }
 0x2f7   : > { %v1247_v61 = vmax.f32 %v1195_v14, 0.0  ;;  %v1268_v20 = vpack.c.bf16 %v1246_v59, %v1244_v18  ;;  %v1672_v14 = vld [vmem:[#allocation3 + $0x70] sm:$0xff] }
 0x2f8   : > { %v1199_v19 = vpop.f32.mrf.mxu0 }
 0x2f9   : > { %v1269_v56 = vpack.c.bf16 %v1247_v61, %v1245_v60  ;;  %v1248_v16 = vmax.f32 %v1199_v19, 0.0  ;;  %v1673_v19 = vld [vmem:[#allocation3 + $0x38] sm:$0xff] }
 0x2fa   : > { %v1201_v57 = vpop.f32.mrf.mxu0 }
 0x2fb   : > { %1540 = vmatprep.mubr.bf16.mxu1 %v1269_v56  ;;  %v1249_v11 = vmax.f32 %v1201_v57, 0.0  ;;  %v1632_v56 = vpop.xlane.xlu0 %1631 }
 0x2fc   : > { %v1203_v62 = vpop.f32.mrf.mxu0  ;;  %1541 = vmatmul.mubr.bf16.gmra.mxu1 %v1268_v20 }
 0x2fd   : > { %v1250_v0 = vmax.f32 %v1203_v62, 0.0 }
 0x2fe   : > { %v1205_v10 = vpop.f32.mrf.mxu0 }
 0x2ff   : > { %v1251_v15 = vmax.f32 %v1205_v10, 0.0  ;;  %v1270_v1 = vpack.c.bf16 %v1250_v0, %v1248_v16  ;;  %v1674_v0 = vld [vmem:[#allocation3 + $0x48] sm:$0xff]  ;;  %v1675_v16 = vld [vmem:[#allocation3 + $0xf8] sm:$0xff] }
 0x300   : > { %v1209_v27 = vpop.f32.mrf.mxu0 }
 0x301   : > { %v1271_v32 = vpack.c.bf16 %v1251_v15, %v1249_v11  ;;  %v1252_v9 = vmax.f32 %v1209_v27, 0.0  ;;  %v1635_v27 = vpop.xlane.xlu1 %1634 }
 0x302   : > { %v1211_v63 = vpop.f32.mrf.mxu0 }
 0x303   : > { %1550 = vmatprep.mubr.bf16.mxu1 %v1271_v32  ;;  %v1253_v4 = vmax.f32 %v1211_v63, 0.0 }
 0x304   : > { %v1213_v2 = vpop.f32.mrf.mxu0  ;;  %1551 = vmatmul.mubr.bf16.gmra.mxu1 %v1270_v1 }
 0x305   : > { %v1254_v5 = vmax.f32 %v1213_v2, 0.0  ;;  %v1676_v2 = vld [vmem:[#allocation3 + $0x78] sm:$0xff] }
 0x306   : > { %v1215_v3 = vpop.f32.mrf.mxu0 }
 0x307   : > { %v1255_v6 = vmax.f32 %v1215_v3, 0.0  ;;  %v1272_v17 = vpack.c.bf16 %v1254_v5, %v1252_v9  ;;  %v1638_v9 = vpop.xlane.xlu0 %1637 }
 0x308   : > { %v1219_v28 = vpop.f32.mrf.mxu0 }
 0x309   : > { %v1273_v29 = vpack.c.bf16 %v1255_v6, %v1253_v4  ;;  %v1256_v25 = vmax.f32 %v1219_v28, 0.0  ;;  %v1677_v6 = vld [vmem:[#allocation3 + $0x88] sm:$0xff] }
 0x30a   : > { %v1221_v30 = vpop.f32.mrf.mxu0 }
 0x30b   : > { %1560 = vmatprep.mubr.bf16.mxu1 %v1273_v29  ;;  %v1257_v23 = vmax.f32 %v1221_v30, 0.0  ;;  %v1678_v30 = vld [vmem:[#allocation3 + $0xf0] sm:$0xff] }
 0x30c   : > { %v1223_v31 = vpop.f32.mrf.mxu0  ;;  %1561 = vmatmul.mubr.bf16.gmra.mxu1 %v1272_v17 }
 0x30d   : > { %v1258_v21 = vmax.f32 %v1223_v31, 0.0 }
 0x30e   : > { %v1225_v22 = vpop.f32.mrf.mxu0 }
 0x30f   : > { %v1259_v24 = vmax.f32 %v1225_v22, 0.0  ;;  %v1274_v33 = vpack.c.bf16 %v1258_v21, %v1256_v25 }
 0x311   : > { %v1275_v26 = vpack.c.bf16 %v1259_v24, %v1257_v23  ;;  %v1679_v23 = vld [vmem:[#allocation3 + $0x18] sm:$0xff]  ;;  %v1641_v24 = vpop.xlane.xlu1 %1640 }
 0x313   : > { %1570 = vmatprep.mubr.bf16.mxu1 %v1275_v26 }
 0x314   : > { %1571 = vmatmul.mubr.bf16.gmra.mxu1 %v1274_v33 }
 0x39c   : > { %v1502_v8 = vpop.f32.mrf.mxu1 }
 0x39d   : > { %v1698_v39 = vmul.f32 %v1620_v7, %v1502_v8 }
 0x39e   : > { %v1504_v12 = vpop.f32.mrf.mxu1 }
 0x39f   : > { %v1730_v34 = vadd.f32 %v1698_v39, %v1666_v38  ;;  %v1699_v13 = vmul.f32 %v1620_v7, %v1504_v12  ;;  %v1680_v7 = vld [vmem:[#allocation3 + $0x30] sm:$0xff] }
 0x3a0   : > { %v1506_v35 = vpop.f32.mrf.mxu1  ;;  %v1681_v12 = vld [vmem:[#allocation3 + $0x50] sm:$0xff] }
 0x3a1   : > { %1762 = vst [vmem:[#allocation3 + $0xa8] sm:$0xff] %v1730_v34  ;;  %v1731_v42 = vadd.f32 %v1699_v13, %v1667_v40  ;;  %v1700_v43 = vmul.f32 %v1623_v41, %v1506_v35  ;;  %v1644_v40 = vpop.xlane.xlu0 %1643  ;;  %v1682_v35 = vld [vmem:[#allocation3 + $0xb8] sm:$0xff] }
 0x3a2   : > { %v1508_v48 = vpop.f32.mrf.mxu1 }
 0x3a3   : > { %1763 = vst [vmem:[#allocation3 + $0x68] sm:$0xff] %v1731_v42  ;;  %v1732_v44 = vadd.f32 %v1700_v43, %v1668_v36  ;;  %v1701_v50 = vmul.f32 %v1623_v41, %v1508_v48  ;;  %v1683_v43 = vld [vmem:[#allocation3 + $0xd0] sm:$0xff]  ;;  %v1647_v48 = vpop.xlane.xlu1 %1646 }
 0x3a4   : > { %v1512_v51 = vpop.f32.mrf.mxu1 }
 0x3a5   : > { %1764 = vst [vmem:[#allocation3 + $0x10] sm:$0xff] %v1732_v44  ;;  %v1733_v46 = vadd.f32 %v1701_v50, %v1669_v49  ;;  %v1702_v47 = vmul.f32 %v1626_v37, %v1512_v51  ;;  %v1684_v51 = vld [vmem:[#allocation3 + $0xd8] sm:$0xff] }
 0x3a6   : > { %v1514_v52 = vpop.f32.mrf.mxu1 }
 0x3a7   : > { %1765 = vst [vmem:[#allocation3 + $0xc0] sm:$0xff] %v1733_v46  ;;  %v1734_v55 = vadd.f32 %v1702_v47, %v1670_v45  ;;  %v1703_v58 = vmul.f32 %v1626_v37, %v1514_v52  ;;  %v1685_v52 = vld [vmem:[#allocation3 + $0x58] sm:$0xff] }
 0x3a8   : > { %v1516_v59 = vpop.f32.mrf.mxu1 }
 0x3a9   : > { %1766 = vst [vmem:[#allocation3 + $0xc8] sm:$0xff] %v1734_v55  ;;  %v1735_v60 = vadd.f32 %v1703_v58, %v1671_v53  ;;  %v1704_v61 = vmul.f32 %v1629_v54, %v1516_v59  ;;  %v1650_v53 = vpop.xlane.xlu0 %1649  ;;  %v1686_v59 = vld [vmem:[#allocation3 + $0x80] sm:$0xff] }
 0x3aa   : > { %v1518_v18 = vpop.f32.mrf.mxu1 }
 0x3ab   : > { %1767 = vst [vmem:[#allocation3 + $0xb0] sm:$0xff] %v1735_v60  ;;  %v1736_v20 = vadd.f32 %v1704_v61, %v1672_v14  ;;  %v1705_v57 = vmul.f32 %v1629_v54, %v1518_v18  ;;  %v1687_v18 = vld [vmem:[#allocation3 + $0x40] sm:$0xff] }
 0x3ac   : > { %v1522_v62 = vpop.f32.mrf.mxu1 }
 0x3ad   : > { %1768 = vst [vmem:[#allocation3 + $0x70] sm:$0xff] %v1736_v20  ;;  %v1737_v10 = vadd.f32 %v1705_v57, %v1673_v19  ;;  %v1706_v11 = vmul.f32 %v1632_v56, %v1522_v62  ;;  %v1653_v19 = vpop.xlane.xlu1 %1652  ;;  %v1688_v62 = vld [vmem:[#allocation3 + $0x28] sm:$0xff] }
 0x3ae   : > { %v1524_v15 = vpop.f32.mrf.mxu1 }
 0x3af   : > { %1769 = vst [vmem:[#allocation3 + $0x38] sm:$0xff] %v1737_v10  ;;  %v1738_v32 = vadd.f32 %v1706_v11, %v1674_v0  ;;  %v1707_v1 = vmul.f32 %v1632_v56, %v1524_v15  ;;  %v1689_v15 = vld [vmem:[#allocation3] sm:$0xff] }
 0x3b0   : > { %v1526_v63 = vpop.f32.mrf.mxu1 }
 0x3b1   : > { %1770 = vst [vmem:[#allocation3 + $0x48] sm:$0xff] %v1738_v32  ;;  %v1739_v5 = vadd.f32 %v1707_v1, %v1675_v16  ;;  %v1708_v3 = vmul.f32 %v1635_v27, %v1526_v63  ;;  %v1656_v16 = vpop.xlane.xlu0 %1655  ;;  %v1690_v63 = vld [vmem:[#allocation3 + $0x90] sm:$0xff] }
 0x3b2   : > { %v1528_v4 = vpop.f32.mrf.mxu1 }
 0x3b3   : > { %1771 = vst [vmem:[#allocation3 + $0xf8] sm:$0xff] %v1739_v5  ;;  %v1740_v28 = vadd.f32 %v1708_v3, %v1676_v2  ;;  %v1709_v29 = vmul.f32 %v1635_v27, %v1528_v4  ;;  %v1691_v4 = vld [vmem:[#allocation3 + $0xe8] sm:$0xff] }
 0x3b4   : > { %v1532_v17 = vpop.f32.mrf.mxu1 }
 0x3b5   : > { %1772 = vst [vmem:[#allocation3 + $0x78] sm:$0xff] %v1740_v28  ;;  %v1741_v31 = vadd.f32 %v1709_v29, %v1677_v6  ;;  %v1710_v21 = vmul.f32 %v1638_v9, %v1532_v17  ;;  %v1659_v6 = vpop.xlane.xlu1 %1658  ;;  %v1692_v17 = vld [vmem:[#allocation3 + $0xa0] sm:$0xff] }
 0x3b6   : > { %v1534_v22 = vpop.f32.mrf.mxu1 }
 0x3b7   : > { %1773 = vst [vmem:[#allocation3 + $0x88] sm:$0xff] %v1741_v31  ;;  %v1742_v25 = vadd.f32 %v1710_v21, %v1678_v30  ;;  %v1711_v26 = vmul.f32 %v1638_v9, %v1534_v22  ;;  %v1693_v22 = vld [vmem:[#allocation3 + $0x20] sm:$0xff] }
 0x3b8   : > { %v1536_v33 = vpop.f32.mrf.mxu1 }
 0x3b9   : > { %1774 = vst [vmem:[#allocation3 + $0xf0] sm:$0xff] %v1742_v25  ;;  %v1743_v8 = vadd.f32 %v1711_v26, %v1679_v23  ;;  %v1712_v38 = vmul.f32 %v1641_v24, %v1536_v33  ;;  %v1662_v23 = vpop.xlane.xlu0 %1661  ;;  %v1694_v33 = vld [vmem:[#allocation3 + $0x8] sm:$0xff] }
 0x3ba   : > { %v1538_v39 = vpop.f32.mrf.mxu1 }
 0x3bb   : > { %1775 = vst [vmem:[#allocation3 + $0x18] sm:$0xff] %v1743_v8  ;;  %v1744_v41 = vadd.f32 %v1712_v38, %v1680_v7  ;;  %v1713_v34 = vmul.f32 %v1641_v24, %v1538_v39  ;;  %v1695_v39 = vld [vmem:[#allocation3 + $0xe0] sm:$0xff] }
 0x3bc   : > { %v1542_v13 = vpop.f32.mrf.mxu1 }
 0x3bd   : > { %1776 = vst [vmem:[#allocation3 + $0x30] sm:$0xff] %v1744_v41  ;;  %v1745_v36 = vadd.f32 %v1713_v34, %v1681_v12  ;;  %v1714_v37 = vmul.f32 %v1644_v40, %v1542_v13  ;;  %v1665_v12 = vpop.xlane.xlu1 %1664  ;;  %v1696_v13 = vld [vmem:[#allocation3 + $0x60] sm:$0xff] }
 0x3be   : > { %v1544_v42 = vpop.f32.mrf.mxu1 }
 0x3bf   : > { %1777 = vst [vmem:[#allocation3 + $0x50] sm:$0xff] %v1745_v36  ;;  %v1746_v49 = vadd.f32 %v1714_v37, %v1682_v35  ;;  %v1715_v44 = vmul.f32 %v1644_v40, %v1544_v42  ;;  %v1697_v42 = vld [vmem:[#allocation3 + $0x98] sm:$0xff] }
 0x3c0   : > { %v1546_v50 = vpop.f32.mrf.mxu1 }
 0x3c1   : > { %1778 = vst [vmem:[#allocation3 + $0xb8] sm:$0xff] %v1746_v49  ;;  %v1747_v45 = vadd.f32 %v1715_v44, %v1683_v43  ;;  %v1716_v46 = vmul.f32 %v1647_v48, %v1546_v50 }
 0x3c2   : > { %v1548_v47 = vpop.f32.mrf.mxu1 }
 0x3c3   : > { %1779 = vst [vmem:[#allocation3 + $0xd0] sm:$0xff] %v1747_v45  ;;  %v1748_v54 = vadd.f32 %v1716_v46, %v1684_v51  ;;  %v1717_v55 = vmul.f32 %v1647_v48, %v1548_v47 }
 0x3c4   : > { %v1552_v58 = vpop.f32.mrf.mxu1 }
 0x3c5   : > { %1780 = vst [vmem:[#allocation3 + $0xd8] sm:$0xff] %v1748_v54  ;;  %v1749_v14 = vadd.f32 %v1717_v55, %v1685_v52  ;;  %v1718_v60 = vmul.f32 %v1650_v53, %v1552_v58 }
 0x3c6   : > { %v1554_v61 = vpop.f32.mrf.mxu1 }
 0x3c7   : > { %1781 = vst [vmem:[#allocation3 + $0x58] sm:$0xff] %v1749_v14  ;;  %v1750_v56 = vadd.f32 %v1718_v60, %v1686_v59  ;;  %v1719_v20 = vmul.f32 %v1650_v53, %v1554_v61 }
 0x3c8   : > { %v1556_v57 = vpop.f32.mrf.mxu1 }
 0x3c9   : > { %1782 = vst [vmem:[#allocation3 + $0x80] sm:$0xff] %v1750_v56  ;;  %v1751_v0 = vadd.f32 %v1719_v20, %v1687_v18  ;;  %v1720_v10 = vmul.f32 %v1653_v19, %v1556_v57 }
 0x3ca   : > { %v1558_v11 = vpop.f32.mrf.mxu1 }
 0x3cb   : > { %1783 = vst [vmem:[#allocation3 + $0x40] sm:$0xff] %v1751_v0  ;;  %v1752_v27 = vadd.f32 %v1720_v10, %v1688_v62  ;;  %v1721_v32 = vmul.f32 %v1653_v19, %v1558_v11 }
 0x3cc   : > { %v1562_v1 = vpop.f32.mrf.mxu1 }
 0x3cd   : > { %1784 = vst [vmem:[#allocation3 + $0x28] sm:$0xff] %v1752_v27  ;;  %v1753_v2 = vadd.f32 %v1721_v32, %v1689_v15  ;;  %v1722_v5 = vmul.f32 %v1656_v16, %v1562_v1 }
 0x3ce   : > { %v1564_v3 = vpop.f32.mrf.mxu1 }
 0x3cf   : > { %1785 = vst [vmem:[#allocation3] sm:$0xff] %v1753_v2  ;;  %v1754_v9 = vadd.f32 %v1722_v5, %v1690_v63  ;;  %v1723_v28 = vmul.f32 %v1656_v16, %v1564_v3 }
 0x3d0   : > { %v1566_v29 = vpop.f32.mrf.mxu1 }
 0x3d1   : > { %1786 = vst [vmem:[#allocation3 + $0x90] sm:$0xff] %v1754_v9  ;;  %v1755_v30 = vadd.f32 %v1723_v28, %v1691_v4  ;;  %v1724_v31 = vmul.f32 %v1659_v6, %v1566_v29 }
 0x3d2   : > { %v1568_v21 = vpop.f32.mrf.mxu1 }
 0x3d3   : > { %1787 = vst [vmem:[#allocation3 + $0xe8] sm:$0xff] %v1755_v30  ;;  %v1756_v24 = vadd.f32 %v1724_v31, %v1692_v17  ;;  %v1725_v25 = vmul.f32 %v1659_v6, %v1568_v21 }
 0x3d4   : > { %v1572_v26 = vpop.f32.mrf.mxu1 }
 0x3d5   : > { %1788 = vst [vmem:[#allocation3 + $0xa0] sm:$0xff] %v1756_v24  ;;  %v1757_v7 = vadd.f32 %v1725_v25, %v1693_v22  ;;  %v1726_v8 = vmul.f32 %v1662_v23, %v1572_v26 }
 0x3d6   : > { %v1574_v38 = vpop.f32.mrf.mxu1 }
 0x3d7   : > { %1789 = vst [vmem:[#allocation3 + $0x20] sm:$0xff] %v1757_v7  ;;  %v1758_v40 = vadd.f32 %v1726_v8, %v1694_v33  ;;  %v1727_v41 = vmul.f32 %v1662_v23, %v1574_v38 }
 0x3d8   : > { %v1576_v34 = vpop.f32.mrf.mxu1 }
 0x3d9   : > { %1790 = vst [vmem:[#allocation3 + $0x8] sm:$0xff] %v1758_v40  ;;  %v1759_v35 = vadd.f32 %v1727_v41, %v1695_v39  ;;  %v1728_v36 = vmul.f32 %v1665_v12, %v1576_v34 }
 0x3da   : > { %v1578_v37 = vpop.f32.mrf.mxu1 }
 0x3db   : > { %1791 = vst [vmem:[#allocation3 + $0xe0] sm:$0xff] %v1759_v35  ;;  %v1760_v43 = vadd.f32 %v1728_v36, %v1696_v13  ;;  %v1729_v48 = vmul.f32 %v1665_v12, %v1578_v37 }
 0x3dd   : > { %1792 = vst [vmem:[#allocation3 + $0x60] sm:$0xff] %v1760_v43  ;;  %v1761_v49 = vadd.f32 %v1729_v48, %v1697_v42 }
 0x3df   : > { %1793 = vst [vmem:[#allocation3 + $0x98] sm:$0xff] %v1761_v49 }
 0x3e0 PF: > { %s4066_s2 = sld [smem:[#allocation33_spill]] }
 0x3e1   : > { %s4067_s25 = sld [smem:[#allocation32_spill]] }
 0x3e6   : > { %p1794_p13 = scmp.eq.s32.totalorder %s4066_s2, 3 }
 0x3e7   : > { %p1795_p0 = scmp.eq.s32.totalorder %s4067_s25, 1 }
 0x3e9   : > { %p1796_p6 = pnand %p1795_p0, %p1794_p13 }
 0x3eb   : > { %1799 = sbr.rel (%p1796_p6) target bundleno = 1045 (0x415), region = 64 }
 0x3f0   : > { %v1800_v44 = vld [vmem:[#allocation3 + $0xa8] sm:$0xff]  ;;  %v1864_v50 = vld [vmem:[#allocation2 + $0x30] sm:$0xff]  ;;  %v1944_v51 = vld [vmem:[%s3383_s29] sm:$0xff] }
 0x3f1   : > { %vm1832_vm2 = vcmp.ne.f32.partialorder %v1800_v44, 0.0  ;;  %v1880_v45 = vunpack.c.l.bf16 %v1864_v50  ;;  %v1801_v46 = vld [vmem:[#allocation3 + $0x68] sm:$0xff]  ;;  %v1881_v47 = vunpack.c.h.bf16 %v1864_v50  ;;  %v1802_v53 = vld [vmem:[#allocation3 + $0x10] sm:$0xff]  ;;  %v1865_v54 = vld [vmem:[#allocation2] sm:$0xff] }
 0x3f2   : > { %v1945_v52 = vld [vmem:[%s3383_s29 + $0x8] sm:$0xff]  ;;  %vm1833_vm3 = vcmp.ne.f32.partialorder %v1801_v46, 0.0  ;;  %vm1834_vm4 = vcmp.ne.f32.partialorder %v1802_v53, 0.0  ;;  %v1803_v55 = vld [vmem:[#allocation3 + $0xc0] sm:$0xff]  ;;  %v1882_v14 = vunpack.c.l.bf16 %v1865_v54  ;;  %v1946_v60 = vld [vmem:[%s3383_s29 + $0x10] sm:$0xff]  ;;  %v1883_v20 = vunpack.c.h.bf16 %v1865_v54 }
 0x3f3   : > { %v1912_v58 = vsel %vm1832_vm2, %v1800_v44, %v1880_v45  ;;  %v1913_v59 = vsel %vm1833_vm3, %v1801_v46, %v1881_v47  ;;  %vm1835_vm5 = vcmp.ne.f32.partialorder %v1803_v55, 0.0  ;;  %v1804_v61 = vld [vmem:[#allocation3 + $0xc8] sm:$0xff]  ;;  %v1866_v18 = vld [vmem:[#allocation2 + $0x58] sm:$0xff]  ;;  %v1948_v62 = vld [vmem:[%s3383_s29 + $0x20] sm:$0xff] }
 0x3f4   : > { %v1976_v19 = vadd.f32 %v1944_v51, %v1912_v58  ;;  %v1977_v56 = vadd.f32 %v1945_v52, %v1913_v59  ;;  %v1947_v57 = vld [vmem:[%s3383_s29 + $0x18] sm:$0xff]  ;;  %vm1836_vm6 = vcmp.ne.f32.partialorder %v1804_v61, 0.0  ;;  %v1805_v0 = vld [vmem:[#allocation3 + $0xb0] sm:$0xff]  ;;  %v1914_v10 = vsel %vm1834_vm4, %v1802_v53, %v1882_v14  ;;  %v1949_v16 = vld [vmem:[%s3383_s29 + $0x28] sm:$0xff] }
 0x3f5   : > { %v1884_v11 = vunpack.c.l.bf16 %v1866_v18  ;;  %vm1837_vm7 = vcmp.ne.f32.partialorder %v1805_v0, 0.0  ;;  %v1885_v15 = vunpack.c.h.bf16 %v1866_v18  ;;  %v1806_v27 = vld [vmem:[#allocation3 + $0x70] sm:$0xff]  ;;  %v1867_v32 = vld [vmem:[#allocation2 + $0x18] sm:$0xff]  ;;  %v1978_v1 = vadd.f32 %v1946_v60, %v1914_v10  ;;  %v1808_v4 = vld [vmem:[#allocation3 + $0x48] sm:$0xff] }
 0x3f6   : > { %2008 = vst [vmem:[%s3413_s27] sm:$0xff] %v1976_v19  ;;  %2009 = vst [vmem:[%s3413_s27 + $0x8] sm:$0xff] %v1977_v56  ;;  %v1915_v63 = vsel %vm1835_vm5, %v1803_v55, %v1883_v20  ;;  %vm1838_vm8 = vcmp.ne.f32.partialorder %v1806_v27, 0.0  ;;  %v1886_v2 = vunpack.c.l.bf16 %v1867_v32  ;;  %v1950_v5 = vld [vmem:[%s3383_s29 + $0x30] sm:$0xff]  ;;  %v1807_v3 = vld [vmem:[#allocation3 + $0x38] sm:$0xff]  ;;  %v1887_v22 = vunpack.c.h.bf16 %v1867_v32 }
 0x3f7   : > { %v1979_v6 = vadd.f32 %v1947_v57, %v1915_v63  ;;  %v1916_v9 = vsel %vm1836_vm6, %v1804_v61, %v1884_v11  ;;  %v1917_v28 = vsel %vm1837_vm7, %v1805_v0, %v1885_v15  ;;  %vm1839_vm9 = vcmp.ne.f32.partialorder %v1807_v3, 0.0  ;;  %v1868_v29 = vld [vmem:[#allocation2 + $0x50] sm:$0xff]  ;;  %v1809_v17 = vld [vmem:[#allocation3 + $0xf8] sm:$0xff]  ;;  %2010 = vst [vmem:[%s3413_s27 + $0x10] sm:$0xff] %v1978_v1  ;;  %v1869_v25 = vld [vmem:[#allocation2 + $0x68] sm:$0xff] }
 0x3f8   : > { %v1980_v30 = vadd.f32 %v1948_v62, %v1916_v9  ;;  %v1981_v31 = vadd.f32 %v1949_v16, %v1917_v28  ;;  %v1918_v21 = vsel %vm1838_vm8, %v1806_v27, %v1886_v2  ;;  %v1951_v23 = vld [vmem:[%s3383_s29 + $0x38] sm:$0xff]  ;;  %vm1840_vm10 = vcmp.ne.f32.partialorder %v1808_v4, 0.0  ;;  %v1952_v7 = vld [vmem:[%s3383_s29 + $0x40] sm:$0xff]  ;;  %v1953_v8 = vld [vmem:[%s3383_s29 + $0x48] sm:$0xff] }
 0x3f9   : > { %v1810_v24 = vld [vmem:[#allocation3 + $0x78] sm:$0xff]  ;;  %2011 = vst [vmem:[%s3413_s27 + $0x18] sm:$0xff] %v1979_v6  ;;  %v1982_v26 = vadd.f32 %v1950_v5, %v1918_v21  ;;  %v1888_v33 = vunpack.c.l.bf16 %v1868_v29  ;;  %vm1841_vm11 = vcmp.ne.f32.partialorder %v1809_v17, 0.0  ;;  %v1811_v38 = vld [vmem:[#allocation3 + $0x88] sm:$0xff]  ;;  %v1919_v39 = vsel %vm1839_vm9, %v1807_v3, %v1887_v22  ;;  %v1954_v41 = vld [vmem:[%s3383_s29 + $0x50] sm:$0xff] }
 0x3fa   : > { %2012 = vst [vmem:[%s3413_s27 + $0x20] sm:$0xff] %v1980_v30  ;;  %2013 = vst [vmem:[%s3413_s27 + $0x28] sm:$0xff] %v1981_v31  ;;  %v1889_v12 = vunpack.c.h.bf16 %v1868_v29  ;;  %vm1842_vm12 = vcmp.ne.f32.partialorder %v1810_v24, 0.0  ;;  %v1890_v40 = vunpack.c.l.bf16 %v1869_v25  ;;  %v1812_v34 = vld [vmem:[#allocation3 + $0xf0] sm:$0xff]  ;;  %v1870_v13 = vld [vmem:[#allocation2 + $0x8] sm:$0xff]  ;;  %v1983_v35 = vadd.f32 %v1951_v23, %v1919_v39 }
 0x3fb   : > { %2014 = vst [vmem:[%s3413_s27 + $0x30] sm:$0xff] %v1982_v26  ;;  %v1920_v36 = vsel %vm1840_vm10, %v1808_v4, %v1888_v33  ;;  %vm1843_vm13 = vcmp.ne.f32.partialorder %v1811_v38, 0.0  ;;  %v1891_v37 = vunpack.c.h.bf16 %v1869_v25  ;;  %v1955_v42 = vld [vmem:[%s3383_s29 + $0x58] sm:$0xff]  ;;  %v1814_v48 = vld [vmem:[#allocation3 + $0x30] sm:$0xff]  ;;  %vm1844_vm14 = vcmp.ne.f32.partialorder %v1812_v34, 0.0  ;;  %v1871_v51 = vld [vmem:[#allocation2 + $0x48] sm:$0xff] }
 0x3fc   : > { %v1813_v43 = vld [vmem:[#allocation3 + $0x18] sm:$0xff]  ;;  %v1984_v49 = vadd.f32 %v1952_v7, %v1920_v36  ;;  %v1921_v44 = vsel %vm1841_vm11, %v1809_v17, %v1889_v12  ;;  %v1922_v50 = vsel %vm1842_vm12, %v1810_v24, %v1890_v40  ;;  %v1815_v45 = vld [vmem:[#allocation3 + $0x50] sm:$0xff]  ;;  %2015 = vst [vmem:[%s3413_s27 + $0x38] sm:$0xff] %v1983_v35  ;;  %v1892_v53 = vunpack.c.l.bf16 %v1870_v13  ;;  %v1956_v54 = vld [vmem:[%s3383_s29 + $0x60] sm:$0xff] }
 0x3fd   : > { %v1985_v46 = vadd.f32 %v1953_v8, %v1921_v44  ;;  %v1986_v47 = vadd.f32 %v1954_v41, %v1922_v50  ;;  %v1923_v52 = vsel %vm1843_vm13, %v1811_v38, %v1891_v37  ;;  %v1816_v55 = vld [vmem:[#allocation3 + $0xb8] sm:$0xff]  ;;  %v1872_v58 = vld [vmem:[#allocation2 + $0x40] sm:$0xff]  ;;  %vm1845_vm15 = vcmp.ne.f32.partialorder %v1813_v43, 0.0  ;;  %v1957_v60 = vld [vmem:[%s3383_s29 + $0x68] sm:$0xff] }
 0x3fe   : > { %2016 = vst [vmem:[%s3413_s27 + $0x40] sm:$0xff] %v1984_v49  ;;  %v1987_v59 = vadd.f32 %v1955_v42, %v1923_v52  ;;  %v1893_v14 = vunpack.c.h.bf16 %v1870_v13  ;;  %vm1846_vm0 = vcmp.ne.f32.partialorder %v1814_v48, 0.0  ;;  %v1817_v61 = vld [vmem:[#allocation3 + $0xd0] sm:$0xff]  ;;  %v1924_v18 = vsel %vm1844_vm14, %v1812_v34, %v1892_v53  ;;  %v1959_v57 = vld [vmem:[%s3383_s29 + $0x78] sm:$0xff]  ;;  %v1960_v62 = vld [vmem:[%s3383_s29 + $0x80] sm:$0xff] }
 0x3ff   : > { %2017 = vst [vmem:[%s3413_s27 + $0x48] sm:$0xff] %v1985_v46  ;;  %2018 = vst [vmem:[%s3413_s27 + $0x50] sm:$0xff] %v1986_v47  ;;  %v1894_v19 = vunpack.c.l.bf16 %v1871_v51  ;;  %v1958_v56 = vld [vmem:[%s3383_s29 + $0x70] sm:$0xff]  ;;  %vm1847_vm1 = vcmp.ne.f32.partialorder %v1815_v45, 0.0  ;;  %v1895_v20 = vunpack.c.h.bf16 %v1871_v51  ;;  %v1988_v0 = vadd.f32 %v1956_v54, %v1924_v18  ;;  %v1818_v15 = vld [vmem:[#allocation3 + $0xd8] sm:$0xff] }
 0x400   : > { %2019 = vst [vmem:[%s3413_s27 + $0x58] sm:$0xff] %v1987_v59  ;;  %v1925_v10 = vsel %vm1845_vm15, %v1813_v43, %v1893_v14  ;;  %vm1848_vm2 = vcmp.ne.f32.partialorder %v1816_v55, 0.0  ;;  %v1896_v11 = vunpack.c.l.bf16 %v1872_v58  ;;  %v1873_v16 = vld [vmem:[#allocation2 + $0x20] sm:$0xff]  ;;  %v1819_v27 = vld [vmem:[#allocation3 + $0x58] sm:$0xff]  ;;  %vm1849_vm3 = vcmp.ne.f32.partialorder %v1817_v61, 0.0  ;;  %v1874_v5 = vld [vmem:[#allocation2 + $0x10] sm:$0xff] }
 0x401   : > { %v1989_v32 = vadd.f32 %v1957_v60, %v1925_v10  ;;  %v1926_v1 = vsel %vm1846_vm0, %v1814_v48, %v1894_v19  ;;  %v1927_v63 = vsel %vm1847_vm1, %v1815_v45, %v1895_v20  ;;  %v1820_v2 = vld [vmem:[#allocation3 + $0x80] sm:$0xff]  ;;  %2020 = vst [vmem:[%s3413_s27 + $0x60] sm:$0xff] %v1988_v0  ;;  %v1897_v9 = vunpack.c.h.bf16 %v1872_v58  ;;  %v1961_v28 = vld [vmem:[%s3383_s29 + $0x88] sm:$0xff]  ;;  %v1962_v31 = vld [vmem:[%s3383_s29 + $0x90] sm:$0xff] }
 0x402   : > { %v1990_v3 = vadd.f32 %v1958_v56, %v1926_v1  ;;  %v1991_v4 = vadd.f32 %v1959_v57, %v1927_v63  ;;  %v1928_v6 = vsel %vm1848_vm2, %v1816_v55, %v1896_v11  ;;  %v1821_v29 = vld [vmem:[#allocation3 + $0x40] sm:$0xff]  ;;  %vm1850_vm4 = vcmp.ne.f32.partialorder %v1818_v15, 0.0  ;;  %v1822_v21 = vld [vmem:[#allocation3 + $0x28] sm:$0xff]  ;;  %v1963_v24 = vld [vmem:[%s3383_s29 + $0x98] sm:$0xff] }
 0x403   : > { %2021 = vst [vmem:[%s3413_s27 + $0x68] sm:$0xff] %v1989_v32  ;;  %v1992_v17 = vadd.f32 %v1960_v62, %v1928_v6  ;;  %v1898_v30 = vunpack.c.l.bf16 %v1873_v16  ;;  %vm1851_vm5 = vcmp.ne.f32.partialorder %v1819_v27, 0.0  ;;  %v1929_v22 = vsel %vm1849_vm3, %v1817_v61, %v1897_v9  ;;  %v1964_v26 = vld [vmem:[%s3383_s29 + $0xa0] sm:$0xff]  ;;  %v1875_v33 = vld [vmem:[#allocation2 + $0x38] sm:$0xff]  ;;  %v1965_v39 = vld [vmem:[%s3383_s29 + $0xa8] sm:$0xff] }
 0x404   : > { %2022 = vst [vmem:[%s3413_s27 + $0x70] sm:$0xff] %v1990_v3  ;;  %2023 = vst [vmem:[%s3413_s27 + $0x78] sm:$0xff] %v1991_v4  ;;  %v1899_v23 = vunpack.c.h.bf16 %v1873_v16  ;;  %vm1852_vm6 = vcmp.ne.f32.partialorder %v1820_v2, 0.0  ;;  %v1900_v25 = vunpack.c.l.bf16 %v1874_v5  ;;  %v1993_v7 = vadd.f32 %v1961_v28, %v1929_v22  ;;  %v1823_v12 = vld [vmem:[#allocation3] sm:$0xff]  ;;  %v1824_v40 = vld [vmem:[#allocation3 + $0x90] sm:$0xff] }
 0x405   : > { %2024 = vst [vmem:[%s3413_s27 + $0x80] sm:$0xff] %v1992_v17  ;;  %v1930_v8 = vsel %vm1850_vm4, %v1818_v15, %v1898_v30  ;;  %vm1853_vm7 = vcmp.ne.f32.partialorder %v1821_v29, 0.0  ;;  %v1901_v38 = vunpack.c.h.bf16 %v1874_v5  ;;  %vm1854_vm8 = vcmp.ne.f32.partialorder %v1822_v21, 0.0  ;;  %v1876_v35 = vld [vmem:[#allocation2 + $0x60] sm:$0xff]  ;;  %v1825_v36 = vld [vmem:[#allocation3 + $0xe8] sm:$0xff]  ;;  %v1966_v49 = vld [vmem:[%s3383_s29 + $0xb0] sm:$0xff] }
 0x406   : > { %v1994_v41 = vadd.f32 %v1962_v31, %v1930_v8  ;;  %v1931_v34 = vsel %vm1851_vm5, %v1819_v27, %v1899_v23  ;;  %v1932_v13 = vsel %vm1852_vm6, %v1820_v2, %v1900_v25  ;;  %2025 = vst [vmem:[%s3413_s27 + $0x88] sm:$0xff] %v1993_v7  ;;  %v1902_v48 = vunpack.c.l.bf16 %v1875_v33  ;;  %v1826_v44 = vld [vmem:[#allocation3 + $0xa0] sm:$0xff]  ;;  %v1877_v50 = vld [vmem:[#allocation2 + $0x70] sm:$0xff]  ;;  %v1967_v46 = vld [vmem:[%s3383_s29 + $0xb8] sm:$0xff] }
 0x407   : > { %v1995_v37 = vadd.f32 %v1963_v24, %v1931_v34  ;;  %v1996_v42 = vadd.f32 %v1964_v26, %v1932_v13  ;;  %v1933_v43 = vsel %vm1853_vm7, %v1821_v29, %v1901_v38  ;;  %vm1855_vm9 = vcmp.ne.f32.partialorder %v1823_v12, 0.0  ;;  %v1827_v47 = vld [vmem:[#allocation3 + $0x20] sm:$0xff]  ;;  %v1969_v58 = vld [vmem:[%s3383_s29 + $0xc8] sm:$0xff]  ;;  %v1970_v59 = vld [vmem:[%s3383_s29 + $0xd0] sm:$0xff] }
 0x408   : > { %2026 = vst [vmem:[%s3413_s27 + $0x90] sm:$0xff] %v1994_v41  ;;  %v1997_v51 = vadd.f32 %v1965_v39, %v1933_v43  ;;  %v1903_v45 = vunpack.c.h.bf16 %v1875_v33  ;;  %vm1856_vm10 = vcmp.ne.f32.partialorder %v1824_v40, 0.0  ;;  %v1934_v52 = vsel %vm1854_vm8, %v1822_v21, %v1902_v48  ;;  %v1968_v54 = vld [vmem:[%s3383_s29 + $0xc0] sm:$0xff]  ;;  %v1828_v18 = vld [vmem:[#allocation3 + $0x8] sm:$0xff]  ;;  %v1878_v19 = vld [vmem:[#allocation2 + $0x78] sm:$0xff] }
 0x409   : > { %2027 = vst [vmem:[%s3413_s27 + $0x98] sm:$0xff] %v1995_v37  ;;  %2028 = vst [vmem:[%s3413_s27 + $0xa0] sm:$0xff] %v1996_v42  ;;  %v1904_v53 = vunpack.c.l.bf16 %v1876_v35  ;;  %vm1857_vm11 = vcmp.ne.f32.partialorder %v1825_v36, 0.0  ;;  %v1905_v55 = vunpack.c.h.bf16 %v1876_v35  ;;  %v1998_v14 = vadd.f32 %v1966_v49, %v1934_v52  ;;  %v1829_v56 = vld [vmem:[#allocation3 + $0xe0] sm:$0xff]  ;;  %v1879_v10 = vld [vmem:[#allocation2 + $0x28] sm:$0xff] }
 0x40a   : > { %2029 = vst [vmem:[%s3413_s27 + $0xa8] sm:$0xff] %v1997_v51  ;;  %v1935_v60 = vsel %vm1855_vm9, %v1823_v12, %v1903_v45  ;;  %vm1858_vm12 = vcmp.ne.f32.partialorder %v1826_v44, 0.0  ;;  %v1906_v61 = vunpack.c.l.bf16 %v1877_v50  ;;  %vm1859_vm13 = vcmp.ne.f32.partialorder %v1827_v47, 0.0  ;;  %v1830_v0 = vld [vmem:[#allocation3 + $0x60] sm:$0xff]  ;;  %v1971_v32 = vld [vmem:[%s3383_s29 + $0xd8] sm:$0xff]  ;;  %v1973_v6 = vld [vmem:[%s3383_s29 + $0xe8] sm:$0xff] }
 0x40b   : > { %v1999_v20 = vadd.f32 %v1967_v46, %v1935_v60  ;;  %v1936_v57 = vsel %vm1856_vm10, %v1824_v40, %v1904_v53  ;;  %v1937_v62 = vsel %vm1857_vm11, %v1825_v36, %v1905_v55  ;;  %2030 = vst [vmem:[%s3413_s27 + $0xb0] sm:$0xff] %v1998_v14  ;;  %v1907_v27 = vunpack.c.h.bf16 %v1877_v50  ;;  %v1831_v1 = vld [vmem:[#allocation3 + $0x98] sm:$0xff]  ;;  %v1972_v5 = vld [vmem:[%s3383_s29 + $0xe0] sm:$0xff]  ;;  %v1974_v28 = vld [vmem:[%s3383_s29 + $0xf0] sm:$0xff] }
 0x40c   : > { %v2000_v11 = vadd.f32 %v1968_v54, %v1936_v57  ;;  %v2001_v15 = vadd.f32 %v1969_v58, %v1937_v62  ;;  %v1938_v16 = vsel %vm1858_vm12, %v1826_v44, %v1906_v61  ;;  %vm1860_vm14 = vcmp.ne.f32.partialorder %v1828_v18, 0.0  ;;  %v1975_v31 = vld [vmem:[%s3383_s29 + $0xf8] sm:$0xff] }
 0x40d   : > { %2031 = vst [vmem:[%s3413_s27 + $0xb8] sm:$0xff] %v1999_v20  ;;  %v2002_v63 = vadd.f32 %v1970_v59, %v1938_v16  ;;  %v1908_v2 = vunpack.c.l.bf16 %v1878_v19  ;;  %vm1861_vm15 = vcmp.ne.f32.partialorder %v1829_v56, 0.0  ;;  %v1939_v3 = vsel %vm1859_vm13, %v1827_v47, %v1907_v27 }
 0x40e   : > { %2032 = vst [vmem:[%s3413_s27 + $0xc0] sm:$0xff] %v2000_v11  ;;  %2033 = vst [vmem:[%s3413_s27 + $0xc8] sm:$0xff] %v2001_v15  ;;  %v1909_v4 = vunpack.c.h.bf16 %v1878_v19  ;;  %vm1862_vm0 = vcmp.ne.f32.partialorder %v1830_v0, 0.0  ;;  %v1910_v9 = vunpack.c.l.bf16 %v1879_v10  ;;  %v2003_v29 = vadd.f32 %v1971_v32, %v1939_v3 }
 0x40f   : > { %2034 = vst [vmem:[%s3413_s27 + $0xd0] sm:$0xff] %v2002_v63  ;;  %v1940_v17 = vsel %vm1860_vm14, %v1828_v18, %v1908_v2  ;;  %vm1863_vm1 = vcmp.ne.f32.partialorder %v1831_v1, 0.0  ;;  %v1911_v30 = vunpack.c.h.bf16 %v1879_v10 }
 0x410   : > { %v2004_v21 = vadd.f32 %v1972_v5, %v1940_v17  ;;  %v1941_v22 = vsel %vm1861_vm15, %v1829_v56, %v1909_v4  ;;  %v1942_v23 = vsel %vm1862_vm0, %v1830_v0, %v1910_v9  ;;  %2035 = vst [vmem:[%s3413_s27 + $0xd8] sm:$0xff] %v2003_v29 }
 0x411   : > { %v2005_v24 = vadd.f32 %v1973_v6, %v1941_v22  ;;  %v2006_v25 = vadd.f32 %v1974_v28, %v1942_v23  ;;  %v1943_v26 = vsel %vm1863_vm1, %v1831_v1, %v1911_v30 }
 0x412   : > { %2036 = vst [vmem:[%s3413_s27 + $0xe0] sm:$0xff] %v2004_v21  ;;  %v2007_v33 = vadd.f32 %v1975_v31, %v1943_v26 }
 0x413   : > { %2037 = vst [vmem:[%s3413_s27 + $0xe8] sm:$0xff] %v2005_v24  ;;  %2038 = vst [vmem:[%s3413_s27 + $0xf0] sm:$0xff] %v2006_v25 }
 0x414   : > { %2039 = vst [vmem:[%s3413_s27 + $0xf8] sm:$0xff] %v2007_v33 }
 0x415 PF: > { %s4068_s7 = sld [smem:[#allocation34_spill]]  ;;  %s2055_s11 = sshll.u32 %s3413_s27, 4  ;;  %s3872_s11 = int_to_ptr.vmem [resolvable:$true] %s2055_s11 }
 0x416   : > { %s4069_s9 = sld [smem:[#allocation49_spill]]  ;;  %s2041_s20 = scalar_lea.sflag [#allocation9], %s3379_s12 }
 0x417   : > { %s2790_s23 = scalar_lea.vmem %s3872_s11, 4096  ;;  %p4070_p9 = scmp.ne.s32.totalorder %s4025_s6, 0 }
 0x418   : > { %p2791_p5 = scmp.ne.s32.totalorder %s3872_s11, %s2790_s23  ;;  %s2972_s4 = smov [#allocation13]  }
 0x419   : > { %s2794_s5 = sshll.u32 %s2972_s4, 4  ;;  %s2795_s5 = int_to_ptr.vmem [resolvable:$false] %s2794_s5 }
 0x41a   : > { %p2792_p7 = pnand %p2791_p5, %p4070_p9  ;;  %s2796_s22 = scalar_lea.vmem %s2795_s5, 8192 }
 0x41b   : > { %s2361_s1 = sshll.u32 %s4068_s7, 12  ;;  %p2797_p1 = scmp.lt.s32.totalorder %s3872_s11, %s2795_s5 }
 0x41c   : > { %s3869_s17 = scalar_lea.hbm %s4069_s9, %s2361_s1  ;;  %p2793_p10 = pneg %p2792_p7 }
 0x41d   : > { %p2798_p8 = scmp.lt.s32.totalorder %s2796_s22, %s2790_s23 }
 0x41f   : > { %p2799_p2 = por %p2798_p8, %p2797_p1 }
 0x421   : > { %p2800_p11 = pnand %p2799_p2, %p2793_p10 }
 0x423   : > { %2803 = shalt.err (!%p2800_p11)
}
 0x424   : > { %s2804_s27 = scalar_lea.hbm %s3869_s17, 4096  ;;  %s2808_s18 = scalar_lea.hbm %s4069_s9, 8192 }
 0x425   : > { %p2805_p3 = scmp.ne.s32.totalorder %s3869_s17, %s2804_s27  ;;  %p2809_p13 = scmp.lt.s32.totalorder %s3869_s17, %s4069_s9 }
 0x426   : > { %p2810_p0 = scmp.lt.s32.totalorder %s2808_s18, %s2804_s27 }
 0x427   : > { %p2806_p4 = pnand %p2805_p3, %p4070_p9 }
 0x428   : > { %p2811_p6 = por %p2810_p0, %p2809_p13 }
 0x429   : > { %p2807_p12 = pneg %p2806_p4 }
 0x42b   : > { %p2812_p5 = pnand %p2811_p6, %p2807_p12 }
 0x42d   : > { %2815 = shalt.err (!%p2812_p5)
}
 0x42e   : > { %s2973_s8 = smov 256   ;;  %s2974_s14 = smov 16  }
 0x42f   : > { %2376 = dma.vmem_to_hbm [thread:$0]  (%p4070_p9), %s3872_s11, 4096, %s3869_s17, %s2041_s20, %s2973_s8, %s2973_s8, %s2974_s14  }
 0x430 PF: > { %s4071_s19 = sld [smem:[#allocation42_spill]]  ;;  %p2401_p7 = scmp.ge.s32.totalorder %s2960_s24, 2 }
 0x431   : > { %s2070_s2 = sand.u32 1, %s2924_s15  }
 0x432   : > { %s2071_s25 = scalar_lea.sflag [#allocation9], %s2070_s2 }
 0x436   : > { %p4072_p10 = scmp.ne.s32.totalorder %s4071_s19, 0 }
 0x438   : > { %p2397_p1 = pnand %p2401_p7, %p4072_p10 }
 0x43a   : > { %p2398_p8 = pneg %p2397_p1 }
 0x43c   : > { %2895 = dma.done.wait (%p2398_p8), %s2071_s25, 4096  }
 0x43d   : > { %2897 = vsyncadd (%p2398_p8), %s2071_s25, 4294963200  ;;  %s36_s24 = sadd.s32 1, %s2960_s24   ;;  %s4074_s1 = sld [smem:[#allocation28_spill]] }
 0x43e   : > { %p3902_p2 = scmp.ge.s32.totalorder %s36_s24, 18   ;;  %s4075_s10 = sld [smem:[#allocation29_spill]] }
 0x43f   : > { %s4076_s11 = sld [smem:[#allocation43_spill]]  ;;  %s4086_s12 = smov %s2916_s13 }
 0x440   : > { %s4077_s6 = sld [smem:[#allocation30_spill]]  ;;  %s4088_s15 = smov %s2928_s16 }
 0x441   : > { %s4078_s14 = sld [smem:[#allocation40_spill]]  ;;  %s4090_s18 = smov %s2948_s21 }
 0x442   : > { %s4079_s29 = sld [smem:[#allocation31_spill]] }
 0x443   : > { %s4080_s17 = sld [smem:[#allocation41_spill]] }
 0x444   : > { %s4081_s19 = sld [smem:[#allocation35_spill]] }
 0x445   : > { %s4082_s20 = sld [smem:[#allocation36_spill]] }
 0x446   : > { %s4083_s26 = sld [smem:[#allocation37_spill]]  ;;  %s4087_s13 = smov %s4077_s6 }
 0x447   : > { %s4084_s22 = sld [smem:[#allocation38_spill]] }
 0x448   : > { %s4085_s23 = sld [smem:[#allocation39_spill]]  ;;  %s4089_s16 = smov %s4079_s29 }
 0x449   :  { %35 = sbr.rel (!%p3902_p2) target bundleno = 41 (0x29), region = 124 }
 0x44c   : > { %s4091_s21 = smov %s4083_s26 }
 0x44e   :  { %2076 = vsyncpa [#allocation8], 1 }
 0x44f   :  { %2078 = vsyncpa [#allocation8 + $0x1], 1 }
 0x450   :  { %2079 = vsyncpa [#allocation11], 1 }
 0x451   :  { %2081 = vsyncpa [#allocation11 + $0x1], 1 }
 0x452   :  { %2082 = vsyncpa [#allocation9], 1 }
 0x453   :  { %2084 = vsyncpa [#allocation9 + $0x1], 1 }

</bundles_post_ra>
